<compile_context>
chip_gen: v6e
topology: v6e:2x2x1
jax: 0.10.0
libtpu: 0.0.40
codegen_flags: <defaults>
</compile_context>

<pallas_src>
import functools

import jax
import jax.numpy as jnp
from jax import lax
from jax.experimental import pallas as pl
from jax.experimental.pallas import tpu as pltpu

_NB_PAD = 128     # bin axis padded to lane width (accumulator/output only)
_TM_MAX = 1024    # max batch rows per grid step (multiple of 8)
_SUBLANES = 8


def _round_up(x, m):
    return ((x + m - 1) // m) * m


def _cdiv(a, b):
    return -(-a // b)


def _ece_kernel(nvalid_ref, logits_ref, labels_ref,
                cnt_ref, conf_ref, acc_ref, *, n_bins, tm, steps_per_p):
    p = pl.program_id(0)   # "parallel" axis (v7x: split across TensorCores)
    s = pl.program_id(1)   # "arbitrary" axis carrying the bin accumulators

    @pl.when(s == 0)
    def _init():
        cnt_ref[...] = jnp.zeros_like(cnt_ref)
        conf_ref[...] = jnp.zeros_like(conf_ref)
        acc_ref[...] = jnp.zeros_like(acc_ref)

    logits = logits_ref[...]                              # (tm, C) f32
    labels = labels_ref[...]                              # (tm, 1) int32
    c = logits.shape[1]

    # --- softmax confidence + argmax prediction -------------------------------
    row_max = jnp.max(logits, axis=1, keepdims=True)                   # (tm, 1)
    denom = jnp.sum(jnp.exp(logits - row_max), axis=1, keepdims=True)  # EUP exp
    conf = 1.0 / denom                 # max softmax prob = exp(0) / denom

    class_ids = lax.broadcasted_iota(jnp.int32, logits.shape, 1)
    pred = jnp.min(jnp.where(logits >= row_max, class_ids, c),
                   axis=1, keepdims=True)                              # (tm, 1)
    acc = (pred == labels).astype(jnp.float32)                         # (tm, 1)

    # --- row-validity mask (batch padding rows contribute nothing) -----------
    n_valid = nvalid_ref[0]
    row0 = (p * steps_per_p + s) * tm
    row_ids = row0 + lax.broadcasted_iota(jnp.int32, (tm, 1), 0)
    valid = (row_ids < n_valid).astype(jnp.float32)                    # (tm, 1)

    # --- bin membership: conf in (b/n_bins, (b+1)/n_bins] ---------------------
    # Padded bins (index >= n_bins) have lower >= 1.0 so conf (<= 1) never
    # lands there; the host epilogue slices [:n_bins] anyway.
    bidx = lax.broadcasted_iota(jnp.int32, (1, _NB_PAD), 1).astype(jnp.float32)
    in_bin = ((conf > bidx / n_bins)
              & (conf <= (bidx + 1.0) / n_bins)).astype(jnp.float32) * valid

    # --- accumulate, deferring the 8-sublane collapse (pure VPU vreg adds) ----
    g = tm // _SUBLANES
    cnt_ref[...] += jnp.sum(in_bin.reshape(g, _SUBLANES, _NB_PAD), axis=0)
    conf_ref[...] += jnp.sum((in_bin * conf).reshape(g, _SUBLANES, _NB_PAD),
                             axis=0)
    acc_ref[...] += jnp.sum((in_bin * acc).reshape(g, _SUBLANES, _NB_PAD),
                            axis=0)


def ece_loss(logits, labels, n_bins=15):
    """Expected Calibration Error, matching torch _ECELoss.forward."""
    n, c = logits.shape

    tm = min(_TM_MAX, _round_up(n, _SUBLANES))
    steps_total = _cdiv(n, tm)
    n_parallel = 2 if steps_total >= 2 else 1     # feeds both TCs on v7x
    steps_per_p = _cdiv(steps_total, n_parallel)
    n_pad = n_parallel * steps_per_p * tm

    logits_f = logits.astype(jnp.float32)
    labels_i = labels.astype(jnp.int32).reshape(n, 1)
    if n_pad != n:
        logits_f = jnp.zeros((n_pad, c), jnp.float32).at[:n].set(logits_f)
        labels_i = jnp.full((n_pad, 1), -1, jnp.int32).at[:n].set(labels_i)

    kernel = functools.partial(_ece_kernel, n_bins=n_bins, tm=tm,
                               steps_per_p=steps_per_p)
    n_valid = jnp.array([n], dtype=jnp.int32)

    acc_shape = jax.ShapeDtypeStruct((n_parallel, _SUBLANES, _NB_PAD),
                                     jnp.float32)
    out_spec = pl.BlockSpec((None, _SUBLANES, _NB_PAD),
                            lambda p, s, nv: (p, 0, 0))

    cost = pl.CostEstimate(
        flops=20 * n_pad * max(c, _NB_PAD),
        transcendentals=n_pad * c,
        bytes_accessed=n_pad * c * 4 + n_pad * 4
        + 3 * n_parallel * _SUBLANES * _NB_PAD * 4,
    )

    cnt_parts, conf_parts, acc_parts = pl.pallas_call(
        kernel,
        out_shape=(acc_shape, acc_shape, acc_shape),
        grid_spec=pltpu.PrefetchScalarGridSpec(
            num_scalar_prefetch=1,
            grid=(n_parallel, steps_per_p),
            in_specs=[
                pl.BlockSpec((tm, c), lambda p, s, nv: (p * steps_per_p + s, 0)),
                pl.BlockSpec((tm, 1), lambda p, s, nv: (p * steps_per_p + s, 0)),
            ],
            out_specs=(out_spec, out_spec, out_spec),
        ),
        compiler_params=pltpu.CompilerParams(
            # Inner axis carries the resident bin accumulators -> arbitrary;
            # outer axis is independent -> parallel (megacore on v7x).
            dimension_semantics=("parallel", "arbitrary"),
            vmem_limit_bytes=32 * 1024 * 1024,
        ),
        cost_estimate=cost,
    )(n_valid, logits_f, labels_i)

    # --- tiny epilogue in plain JAX: collapse partials + weighted |gap| -------
    cnt_b = jnp.sum(cnt_parts, axis=(0, 1))[:n_bins]
    conf_b = jnp.sum(conf_parts, axis=(0, 1))[:n_bins]
    acc_b = jnp.sum(acc_parts, axis=(0, 1))[:n_bins]
    nonzero = cnt_b > 0.0
    safe = jnp.where(nonzero, cnt_b, 1.0)
    gap = jnp.abs(conf_b / safe - acc_b / safe)
    prop = cnt_b / jnp.float32(n)
    ece = jnp.sum(jnp.where(nonzero, gap * prop, 0.0))
    return ece.reshape(1)   # torch returns a (1,) tensor


def _ece_reference(logits, labels, n_bins=15):
    """Pure-JAX reference mirroring the torch code line by line."""
    sm = jax.nn.softmax(logits, axis=1)
    conf = jnp.max(sm, axis=1)
    pred = jnp.argmax(sm, axis=1)
    acc = (pred == labels).astype(jnp.float32)
    bounds = jnp.linspace(0.0, 1.0, n_bins + 1)
    ece = jnp.zeros((1,), dtype=jnp.float32)
    for b in range(n_bins):
        in_bin = (conf > bounds[b]) & (conf <= bounds[b + 1])
        prop = jnp.mean(in_bin.astype(jnp.float32))
        if float(prop) > 0:
            inb = in_bin.astype(jnp.float32)
            acc_in = jnp.sum(acc * inb) / jnp.sum(inb)
            conf_in = jnp.sum(conf * inb) / jnp.sum(inb)
            ece = ece + jnp.abs(conf_in - acc_in) * prop
    return ece


if __name__ == "__main__":
    key = jax.random.PRNGKey(0)

    # Case 1: small, single grid step (256 samples, 16 classes, 15 bins).
    k1, k2, k3, k4 = jax.random.split(key, 4)
    logits1 = jax.random.normal(k1, (256, 16), dtype=jnp.float32) * 3.0
    labels1 = jax.random.randint(k2, (256,), 0, 16, dtype=jnp.int32)
    out1 = ece_loss(logits1, labels1, n_bins=15)
    jax.block_until_ready(out1)
    ref1 = _ece_reference(logits1, labels1, n_bins=15)
    assert out1.shape == (1,)
    assert jnp.allclose(out1, ref1, atol=1e-5, rtol=1e-4), (out1, ref1)

    # Case 2: exercises batch padding + the 2-way parallel / multi-step path.
    logits2 = jax.random.normal(k3, (1300, 10), dtype=jnp.float32) * 2.0
    labels2 = jax.random.randint(k4, (1300,), 0, 10, dtype=jnp.int32)
    out2 = ece_loss(logits2, labels2, n_bins=15)
    jax.block_until_ready(out2)
    ref2 = _ece_reference(logits2, labels2, n_bins=15)
    assert out2.shape == (1,)
    assert jnp.allclose(out2, ref2, atol=1e-5, rtol=1e-4), (out2, ref2)

    print("KERNEL_OK")
</pallas_src>

<mosaic_0001>
module attributes {stable_mosaic.version = 11 : i64} {
  func.func @_ece_kernel(%arg0: i32, %arg1: i32, %arg2: memref<1xi32, #tpu.memory_space<smem>>, %arg3: memref<256x16xf32, #tpu.memory_space<vmem>>, %arg4: memref<256x1xi32, #tpu.memory_space<vmem>>, %arg5: memref<1x8x128xf32, #tpu.memory_space<vmem>>, %arg6: memref<1x8x128xf32, #tpu.memory_space<vmem>>, %arg7: memref<1x8x128xf32, #tpu.memory_space<vmem>>) attributes {dimension_semantics = [#tpu.dimension_semantics<parallel>, #tpu.dimension_semantics<arbitrary>], iteration_bounds = array<i64: 1, 1>, scalar_prefetch = 1 : i64, scratch_operands = 0 : i64, tpu.core_type = #tpu.core_type<tc>, window_params = [{transform_indices = @transform_0, window_bounds = array<i64: 256, 16>}, {transform_indices = @transform_1, window_bounds = array<i64: 256, 1>}, {transform_indices = @transform_2, window_bounds = array<i64: 1, 8, 128>}, {transform_indices = @transform_3, window_bounds = array<i64: 1, 8, 128>}, {transform_indices = @transform_4, window_bounds = array<i64: 1, 8, 128>}]} {
    %c0_i32 = arith.constant 0 : i32
    %0 = arith.cmpi eq, %arg1, %c0_i32 : i32
    %1 = arith.extui %0 : i1 to i32
    %c0_i32_0 = arith.constant 0 : i32
    %2 = arith.cmpi ne, %1, %c0_i32_0 : i32
    scf.if %2 {
      %cst_32 = arith.constant 0.000000e+00 : f32
      %82 = vector.broadcast %cst_32 : f32 to vector<8x128xf32>
      %c0_33 = arith.constant 0 : index
      %c0_34 = arith.constant 0 : index
      %c0_35 = arith.constant 0 : index
      %83 = vector.load %arg5[%c0_33, %c0_34, %c0_35] : memref<1x8x128xf32, #tpu.memory_space<vmem>>, vector<1x8x128xf32>
      %84 = vector.shape_cast %83 : vector<1x8x128xf32> to vector<8x128xf32>
      %85 = vector.shape_cast %82 : vector<8x128xf32> to vector<1x8x128xf32>
      tpu.vector_store %arg5[%c0_33, %c0_34, %c0_35], %85 {strides = array<i32>} : memref<1x8x128xf32, #tpu.memory_space<vmem>>, vector<1x8x128xf32>,
      %cst_36 = arith.constant 0.000000e+00 : f32
      %86 = vector.broadcast %cst_36 : f32 to vector<8x128xf32>
      %c0_37 = arith.constant 0 : index
      %c0_38 = arith.constant 0 : index
      %c0_39 = arith.constant 0 : index
      %87 = vector.load %arg6[%c0_37, %c0_38, %c0_39] : memref<1x8x128xf32, #tpu.memory_space<vmem>>, vector<1x8x128xf32>
      %88 = vector.shape_cast %87 : vector<1x8x128xf32> to vector<8x128xf32>
      %89 = vector.shape_cast %86 : vector<8x128xf32> to vector<1x8x128xf32>
      tpu.vector_store %arg6[%c0_37, %c0_38, %c0_39], %89 {strides = array<i32>} : memref<1x8x128xf32, #tpu.memory_space<vmem>>, vector<1x8x128xf32>,
      %cst_40 = arith.constant 0.000000e+00 : f32
      %90 = vector.broadcast %cst_40 : f32 to vector<8x128xf32>
      %c0_41 = arith.constant 0 : index
      %c0_42 = arith.constant 0 : index
      %c0_43 = arith.constant 0 : index
      %91 = vector.load %arg7[%c0_41, %c0_42, %c0_43] : memref<1x8x128xf32, #tpu.memory_space<vmem>>, vector<1x8x128xf32>
      %92 = vector.shape_cast %91 : vector<1x8x128xf32> to vector<8x128xf32>
      %93 = vector.shape_cast %90 : vector<8x128xf32> to vector<1x8x128xf32>
      tpu.vector_store %arg7[%c0_41, %c0_42, %c0_43], %93 {strides = array<i32>} : memref<1x8x128xf32, #tpu.memory_space<vmem>>, vector<1x8x128xf32>,
    } else {
    }
    %c0 = arith.constant 0 : index
    %c0_1 = arith.constant 0 : index
    %3 = vector.load %arg3[%c0, %c0_1] : memref<256x16xf32, #tpu.memory_space<vmem>>, vector<256x16xf32>
    %c0_2 = arith.constant 0 : index
    %c0_3 = arith.constant 0 : index
    %4 = vector.load %arg4[%c0_2, %c0_3] : memref<256x1xi32, #tpu.memory_space<vmem>>, vector<256x1xi32>
    %cst = arith.constant dense<0xFF800000> : vector<256xf32>
    %5 = vector.multi_reduction <maximumf>, %3, %cst [1] : vector<256x16xf32> to vector<256xf32>
    %6 = vector.shape_cast %5 : vector<256xf32> to vector<256x1xf32>
    %7 = vector.broadcast %6 : vector<256x1xf32> to vector<256x16xf32>
    %8 = arith.subf %3, %7 : vector<256x16xf32>
    %9 = math.exp %8 : vector<256x16xf32>
    %cst_4 = arith.constant dense<0.000000e+00> : vector<256xf32>
    %10 = vector.multi_reduction <add>, %9, %cst_4 [1] : vector<256x16xf32> to vector<256xf32>
    %11 = vector.shape_cast %10 : vector<256xf32> to vector<256x1xf32>
    %cst_5 = arith.constant 1.000000e+00 : f32
    %12 = vector.broadcast %cst_5 : f32 to vector<256x1xf32>
    %13 = arith.divf %12, %11 : vector<256x1xf32>
    %14 = tpu.iota {dimensions = array<i32: 1>} : vector<256x16xi32>
    %15 = vector.broadcast %6 : vector<256x1xf32> to vector<256x16xf32>
    %16 = arith.cmpf oge, %3, %15 : vector<256x16xf32>
    %c16_i32 = arith.constant 16 : i32
    %17 = vector.broadcast %c16_i32 : i32 to vector<256x16xi32>
    %18 = arith.select %16, %14, %17 : vector<256x16xi1>, vector<256x16xi32>
    %cst_6 = arith.constant dense<2147483647> : vector<256xi32>
    %19 = vector.multi_reduction <minsi>, %18, %cst_6 [1] : vector<256x16xi32> to vector<256xi32>
    %20 = vector.shape_cast %19 : vector<256xi32> to vector<256x1xi32>
    %21 = arith.cmpi eq, %20, %4 : vector<256x1xi32>
    %22 = arith.extui %21 : vector<256x1xi1> to vector<256x1xi32>
    %23 = arith.sitofp %22 : vector<256x1xi32> to vector<256x1xf32>
    %c0_7 = arith.constant 0 : index
    %24 = memref.load %arg2[%c0_7] : memref<1xi32, #tpu.memory_space<smem>>
    %c1_i32 = arith.constant 1 : i32
    %25 = arith.muli %arg0, %c1_i32 : i32
    %26 = arith.addi %25, %arg1 : i32
    %c256_i32 = arith.constant 256 : i32
    %27 = arith.muli %26, %c256_i32 : i32
    %28 = tpu.iota {dimensions = array<i32: 0>} : vector<256x1xi32>
    %29 = vector.broadcast %27 : i32 to vector<256x1xi32>
    %30 = arith.addi %29, %28 : vector<256x1xi32>
    %31 = vector.broadcast %24 : i32 to vector<256x1xi32>
    %32 = arith.cmpi slt, %30, %31 : vector<256x1xi32>
    %33 = arith.extui %32 : vector<256x1xi1> to vector<256x1xi32>
    %34 = arith.sitofp %33 : vector<256x1xi32> to vector<256x1xf32>
    %35 = tpu.iota {dimensions = array<i32: 1>} : vector<1x128xi32>
    %36 = arith.sitofp %35 : vector<1x128xi32> to vector<1x128xf32>
    %cst_8 = arith.constant 1.500000e+01 : f32
    %37 = vector.broadcast %cst_8 : f32 to vector<1x128xf32>
    %38 = arith.divf %36, %37 : vector<1x128xf32>
    %39 = vector.broadcast %13 : vector<256x1xf32> to vector<256x128xf32>
    %40 = vector.broadcast %38 : vector<1x128xf32> to vector<256x128xf32>
    %41 = arith.cmpf ogt, %39, %40 : vector<256x128xf32>
    %cst_9 = arith.constant 1.000000e+00 : f32
    %42 = vector.broadcast %cst_9 : f32 to vector<1x128xf32>
    %43 = arith.addf %36, %42 : vector<1x128xf32>
    %cst_10 = arith.constant 1.500000e+01 : f32
    %44 = vector.broadcast %cst_10 : f32 to vector<1x128xf32>
    %45 = arith.divf %43, %44 : vector<1x128xf32>
    %46 = vector.broadcast %13 : vector<256x1xf32> to vector<256x128xf32>
    %47 = vector.broadcast %45 : vector<1x128xf32> to vector<256x128xf32>
    %48 = arith.cmpf ole, %46, %47 : vector<256x128xf32>
    %49 = arith.andi %41, %48 : vector<256x128xi1>
    %50 = arith.extui %49 : vector<256x128xi1> to vector<256x128xi32>
    %51 = arith.sitofp %50 : vector<256x128xi32> to vector<256x128xf32>
    %52 = vector.broadcast %34 : vector<256x1xf32> to vector<256x128xf32>
    %53 = arith.mulf %51, %52 : vector<256x128xf32>
    %c0_11 = arith.constant 0 : index
    %c0_12 = arith.constant 0 : index
    %c0_13 = arith.constant 0 : index
    %54 = vector.load %arg5[%c0_11, %c0_12, %c0_13] : memref<1x8x128xf32, #tpu.memory_space<vmem>>, vector<1x8x128xf32>
    %55 = vector.shape_cast %54 : vector<1x8x128xf32> to vector<8x128xf32>
    %56 = vector.shape_cast %53 : vector<256x128xf32> to vector<32x8x128xf32>
    %cst_14 = arith.constant dense<0.000000e+00> : vector<8x128xf32>
    %57 = vector.multi_reduction <add>, %56, %cst_14 [0] : vector<32x8x128xf32> to vector<8x128xf32>
    %58 = arith.addf %55, %57 : vector<8x128xf32>
    %c0_15 = arith.constant 0 : index
    %c0_16 = arith.constant 0 : index
    %c0_17 = arith.constant 0 : index
    %59 = vector.load %arg5[%c0_15, %c0_16, %c0_17] : memref<1x8x128xf32, #tpu.memory_space<vmem>>, vector<1x8x128xf32>
    %60 = vector.shape_cast %59 : vector<1x8x128xf32> to vector<8x128xf32>
    %61 = vector.shape_cast %58 : vector<8x128xf32> to vector<1x8x128xf32>
    tpu.vector_store %arg5[%c0_15, %c0_16, %c0_17], %61 {strides = array<i32>} : memref<1x8x128xf32, #tpu.memory_space<vmem>>, vector<1x8x128xf32>,
    %c0_18 = arith.constant 0 : index
    %c0_19 = arith.constant 0 : index
    %c0_20 = arith.constant 0 : index
    %62 = vector.load %arg6[%c0_18, %c0_19, %c0_20] : memref<1x8x128xf32, #tpu.memory_space<vmem>>, vector<1x8x128xf32>
    %63 = vector.shape_cast %62 : vector<1x8x128xf32> to vector<8x128xf32>
    %64 = vector.broadcast %13 : vector<256x1xf32> to vector<256x128xf32>
    %65 = arith.mulf %53, %64 : vector<256x128xf32>
    %66 = vector.shape_cast %65 : vector<256x128xf32> to vector<32x8x128xf32>
    %cst_21 = arith.constant dense<0.000000e+00> : vector<8x128xf32>
    %67 = vector.multi_reduction <add>, %66, %cst_21 [0] : vector<32x8x128xf32> to vector<8x128xf32>
    %68 = arith.addf %63, %67 : vector<8x128xf32>
    %c0_22 = arith.constant 0 : index
    %c0_23 = arith.constant 0 : index
    %c0_24 = arith.constant 0 : index
    %69 = vector.load %arg6[%c0_22, %c0_23, %c0_24] : memref<1x8x128xf32, #tpu.memory_space<vmem>>, vector<1x8x128xf32>
    %70 = vector.shape_cast %69 : vector<1x8x128xf32> to vector<8x128xf32>
    %71 = vector.shape_cast %68 : vector<8x128xf32> to vector<1x8x128xf32>
    tpu.vector_store %arg6[%c0_22, %c0_23, %c0_24], %71 {strides = array<i32>} : memref<1x8x128xf32, #tpu.memory_space<vmem>>, vector<1x8x128xf32>,
    %c0_25 = arith.constant 0 : index
    %c0_26 = arith.constant 0 : index
    %c0_27 = arith.constant 0 : index
    %72 = vector.load %arg7[%c0_25, %c0_26, %c0_27] : memref<1x8x128xf32, #tpu.memory_space<vmem>>, vector<1x8x128xf32>
    %73 = vector.shape_cast %72 : vector<1x8x128xf32> to vector<8x128xf32>
    %74 = vector.broadcast %23 : vector<256x1xf32> to vector<256x128xf32>
    %75 = arith.mulf %53, %74 : vector<256x128xf32>
    %76 = vector.shape_cast %75 : vector<256x128xf32> to vector<32x8x128xf32>
    %cst_28 = arith.constant dense<0.000000e+00> : vector<8x128xf32>
    %77 = vector.multi_reduction <add>, %76, %cst_28 [0] : vector<32x8x128xf32> to vector<8x128xf32>
    %78 = arith.addf %73, %77 : vector<8x128xf32>
    %c0_29 = arith.constant 0 : index
    %c0_30 = arith.constant 0 : index
    %c0_31 = arith.constant 0 : index
    %79 = vector.load %arg7[%c0_29, %c0_30, %c0_31] : memref<1x8x128xf32, #tpu.memory_space<vmem>>, vector<1x8x128xf32>
    %80 = vector.shape_cast %79 : vector<1x8x128xf32> to vector<8x128xf32>
    %81 = vector.shape_cast %78 : vector<8x128xf32> to vector<1x8x128xf32>
    tpu.vector_store %arg7[%c0_29, %c0_30, %c0_31], %81 {strides = array<i32>} : memref<1x8x128xf32, #tpu.memory_space<vmem>>, vector<1x8x128xf32>,
    return
  }
  func.func @transform_0(%arg0: i32, %arg1: i32, %arg2: memref<1xi32, #tpu.memory_space<smem>>) -> (i32, i32) {
    %c1_i32 = arith.constant 1 : i32
    %0 = arith.muli %arg0, %c1_i32 : i32
    %1 = arith.addi %0, %arg1 : i32
    %c0_i32 = arith.constant 0 : i32
    %c0_i32_0 = arith.constant 0 : i32
    return %1, %c0_i32 : i32, i32
  }
  func.func @transform_1(%arg0: i32, %arg1: i32, %arg2: memref<1xi32, #tpu.memory_space<smem>>) -> (i32, i32) {
    %c1_i32 = arith.constant 1 : i32
    %0 = arith.muli %arg0, %c1_i32 : i32
    %1 = arith.addi %0, %arg1 : i32
    %c0_i32 = arith.constant 0 : i32
    %c0_i32_0 = arith.constant 0 : i32
    return %1, %c0_i32 : i32, i32
  }
  func.func @transform_2(%arg0: i32, %arg1: i32, %arg2: memref<1xi32, #tpu.memory_space<smem>>) -> (i32, i32, i32) {
    %c0_i32 = arith.constant 0 : i32
    %c0_i32_0 = arith.constant 0 : i32
    %c0_i32_1 = arith.constant 0 : i32
    return %arg0, %c0_i32, %c0_i32_0 : i32, i32, i32
  }
  func.func @transform_3(%arg0: i32, %arg1: i32, %arg2: memref<1xi32, #tpu.memory_space<smem>>) -> (i32, i32, i32) {
    %c0_i32 = arith.constant 0 : i32
    %c0_i32_0 = arith.constant 0 : i32
    %c0_i32_1 = arith.constant 0 : i32
    return %arg0, %c0_i32, %c0_i32_0 : i32, i32, i32
  }
  func.func @transform_4(%arg0: i32, %arg1: i32, %arg2: memref<1xi32, #tpu.memory_space<smem>>) -> (i32, i32, i32) {
    %c0_i32 = arith.constant 0 : i32
    %c0_i32_0 = arith.constant 0 : i32
    %c0_i32_1 = arith.constant 0 : i32
    return %arg0, %c0_i32, %c0_i32_0 : i32, i32, i32
  }
}

</mosaic_0001>

<bundles_post_ra>
// kernel: tpu_custom_call.1
= control target key start
LH: loop header
LB: loop body
LE: loop exit
PB: predicated region body
PF: predicated region fallthrough
CT: control target
= control target key end

     0   :  { %12 = vsyncpa [#allocation5], 0  ;;  %vm133_vm0 = vcmask 130048   ;;  %s3875_s0 = inlined_call_operand.<no memory space> [shape: s32[1], index: 0, kind: input, shape index: {}]   ;;  %s3876_s1 = inlined_call_operand.vmem [shape: f32[256,16], index: 1, kind: input, shape index: {}]   ;;  %s3877_s2 = inlined_call_operand.vmem [shape: s32[256,1], index: 2, kind: input, shape index: {}]   ;;  %s3878_s3 = inlined_call_operand.hbm [shape: f32[1,8,128], index: 3, kind: output, shape index: {0}]   ;;  %s3879_s4 = inlined_call_operand.hbm [shape: f32[1,8,128], index: 4, kind: output, shape index: {1}]   ;;  %s3880_s5 = inlined_call_operand.hbm [shape: f32[1,8,128], index: 5, kind: output, shape index: {2}]  }
   0x1   :  { %v2208_v0 = vld [vmem:[%s3876_s1] sm:$0xff]  ;;  %v2213_v1 = vld [vmem:[%s3876_s1 + $0x10] sm:$0xff]  ;;  %v2218_v2 = vld [vmem:[%s3876_s1 + $0x8] sm:$0xff] }
   0x2   :  { %v134_v3 = vsel %vm133_vm0, %v2208_v0, -inf  ;;  %v140_v4 = vsel %vm133_vm0, %v2213_v1, -inf  ;;  %v2227_v5 = vld [vmem:[%s3876_s1 + $0x18] sm:$0xff]  ;;  %v137_v6 = vsel %vm133_vm0, %v2218_v2, -inf  ;;  %v2236_v8 = vld [vmem:[%s3876_s1 + $0x20] sm:$0xff]  ;;  %v2241_v9 = vld [vmem:[%s3876_s1 + $0x28] sm:$0xff] }
   0x3   :  { %135 = vmax.xlane.f32.xlu0 %v134_v3  ;;  %141 = vmax.xlane.f32.xlu1 %v140_v4  ;;  %v143_v7 = vsel %vm133_vm0, %v2227_v5, -inf  ;;  %v146_v10 = vsel %vm133_vm0, %v2236_v8, -inf  ;;  %v149_v11 = vsel %vm133_vm0, %v2241_v9, -inf  ;;  %v2250_v12 = vld [vmem:[%s3876_s1 + $0x30] sm:$0xff]  ;;  %v2255_v13 = vld [vmem:[%s3876_s1 + $0x38] sm:$0xff] }
   0x4   :  { %v152_v14 = vsel %vm133_vm0, %v2250_v12, -inf  ;;  %v155_v15 = vsel %vm133_vm0, %v2255_v13, -inf }
   0x7   :  { %138 = vmax.xlane.f32.xlu0 %v137_v6  ;;  %144 = vmax.xlane.f32.xlu1 %v143_v7 }
   0xb   :  { %147 = vmax.xlane.f32.xlu0 %v146_v10  ;;  %150 = vmax.xlane.f32.xlu1 %v149_v11 }
   0xc   :  { %13 = vsyncpa [#allocation7], 0  ;;  %v2264_v16 = vld [vmem:[%s3876_s1 + $0x40] sm:$0xff]  ;;  %v2269_v17 = vld [vmem:[%s3876_s1 + $0x48] sm:$0xff]  ;;  %v3881_v3 = vlaneseq  ;;  %s2172_s17 = smov [#allocation6]   ;;  %s2173_s19 = smov [#allocation4]  }
   0xd   :  { %v158_v18 = vsel %vm133_vm0, %v2264_v16, -inf  ;;  %v161_v19 = vsel %vm133_vm0, %v2269_v17, -inf  ;;  %v2278_v20 = vld [vmem:[%s3876_s1 + $0x50] sm:$0xff]  ;;  %v2283_v21 = vld [vmem:[%s3876_s1 + $0x58] sm:$0xff]  ;;  %v2292_v24 = vld [vmem:[%s3876_s1 + $0x60] sm:$0xff]  ;;  %s1833_s18 = sshll.u32 %s2172_s17, 4  ;;  %s1834_s18 = int_to_ptr.vmem [resolvable:$true] %s1833_s18 }
   0xe   :  { %v164_v22 = vsel %vm133_vm0, %v2278_v20, -inf  ;;  %v167_v23 = vsel %vm133_vm0, %v2283_v21, -inf  ;;  %v2297_v25 = vld [vmem:[%s3876_s1 + $0x68] sm:$0xff]  ;;  %v170_v26 = vsel %vm133_vm0, %v2292_v24, -inf  ;;  %v2306_v28 = vld [vmem:[%s3876_s1 + $0x70] sm:$0xff]  ;;  %v2311_v29 = vld [vmem:[%s3876_s1 + $0x78] sm:$0xff]  ;;  %p2111_p1 = scmp.lt.s32.totalorder %s1834_s18, %s1834_s18 }
   0xf   :  { %153 = vmax.xlane.f32.xlu0 %v152_v14  ;;  %156 = vmax.xlane.f32.xlu1 %v155_v15  ;;  %v173_v27 = vsel %vm133_vm0, %v2297_v25, -inf  ;;  %v176_v30 = vsel %vm133_vm0, %v2306_v28, -inf  ;;  %v179_v31 = vsel %vm133_vm0, %v2311_v29, -inf  ;;  %v2320_v32 = vld [vmem:[%s3876_s1 + $0x80] sm:$0xff]  ;;  %v2325_v33 = vld [vmem:[%s3876_s1 + $0x88] sm:$0xff]  ;;  %v2334_v36 = vld [vmem:[%s3876_s1 + $0x90] sm:$0xff] }
  0x10   :  { %v182_v34 = vsel %vm133_vm0, %v2320_v32, -inf  ;;  %v185_v35 = vsel %vm133_vm0, %v2325_v33, -inf  ;;  %v2339_v37 = vld [vmem:[%s3876_s1 + $0x98] sm:$0xff]  ;;  %v188_v38 = vsel %vm133_vm0, %v2334_v36, -inf  ;;  %v2348_v40 = vld [vmem:[%s3876_s1 + $0xa0] sm:$0xff]  ;;  %v2353_v41 = vld [vmem:[%s3876_s1 + $0xa8] sm:$0xff] }
  0x11   :  { %v191_v39 = vsel %vm133_vm0, %v2339_v37, -inf  ;;  %v194_v42 = vsel %vm133_vm0, %v2348_v40, -inf  ;;  %v197_v43 = vsel %vm133_vm0, %v2353_v41, -inf  ;;  %v2362_v44 = vld [vmem:[%s3876_s1 + $0xb0] sm:$0xff]  ;;  %v2367_v45 = vld [vmem:[%s3876_s1 + $0xb8] sm:$0xff]  ;;  %v2376_v48 = vld [vmem:[%s3876_s1 + $0xc0] sm:$0xff] }
  0x12   :  { %v200_v46 = vsel %vm133_vm0, %v2362_v44, -inf  ;;  %v203_v47 = vsel %vm133_vm0, %v2367_v45, -inf  ;;  %v2381_v49 = vld [vmem:[%s3876_s1 + $0xc8] sm:$0xff]  ;;  %v206_v50 = vsel %vm133_vm0, %v2376_v48, -inf  ;;  %v2390_v52 = vld [vmem:[%s3876_s1 + $0xd0] sm:$0xff]  ;;  %v2395_v53 = vld [vmem:[%s3876_s1 + $0xd8] sm:$0xff] }
  0x13   :  { %159 = vmax.xlane.f32.xlu0 %v158_v18  ;;  %162 = vmax.xlane.f32.xlu1 %v161_v19  ;;  %v209_v51 = vsel %vm133_vm0, %v2381_v49, -inf  ;;  %v212_v54 = vsel %vm133_vm0, %v2390_v52, -inf  ;;  %v215_v55 = vsel %vm133_vm0, %v2395_v53, -inf  ;;  %v2404_v56 = vld [vmem:[%s3876_s1 + $0xe0] sm:$0xff]  ;;  %v2409_v57 = vld [vmem:[%s3876_s1 + $0xe8] sm:$0xff]  ;;  %v2418_v60 = vld [vmem:[%s3876_s1 + $0xf0] sm:$0xff] }
  0x14   :  { %v218_v58 = vsel %vm133_vm0, %v2404_v56, -inf  ;;  %v221_v59 = vsel %vm133_vm0, %v2409_v57, -inf  ;;  %v2423_v61 = vld [vmem:[%s3876_s1 + $0xf8] sm:$0xff]  ;;  %v224_v62 = vsel %vm133_vm0, %v2418_v60, -inf  ;;  %v2430_v4 = vand.u32 127, %v3881_v3  ;;  %s1823_s20 = sshll.u32 %s2173_s19, 4  ;;  %s1824_s20 = int_to_ptr.vmem [resolvable:$true] %s1823_s20 }
  0x15   :  { %v227_v63 = vsel %vm133_vm0, %v2423_v61, -inf  ;;  %s2106_s21 = scalar_lea.vmem %s1834_s18, 128 }
  0x16   :  { %p2107_p0 = scmp.ne.s32.totalorder %s1834_s18, %s2106_s21  ;;  %p2112_p2 = scmp.lt.s32.totalorder %s2106_s21, %s2106_s21 }
  0x17   :  { %165 = vmax.xlane.f32.xlu0 %v164_v22  ;;  %168 = vmax.xlane.f32.xlu1 %v167_v23 }
  0x18   :  { %p2113_p3 = por %p2112_p2, %p2111_p1 }
  0x1a   :  { %p2114_p4 = pnand %p2113_p3, %p2107_p0 }
  0x1b   :  { %171 = vmax.xlane.f32.xlu0 %v170_v26  ;;  %174 = vmax.xlane.f32.xlu1 %v173_v27 }
  0x1f   :  { %177 = vmax.xlane.f32.xlu0 %v176_v30  ;;  %180 = vmax.xlane.f32.xlu1 %v179_v31 }
  0x23   :  { %183 = vmax.xlane.f32.xlu0 %v182_v34  ;;  %186 = vmax.xlane.f32.xlu1 %v185_v35 }
  0x27   :  { %189 = vmax.xlane.f32.xlu0 %v188_v38  ;;  %192 = vmax.xlane.f32.xlu1 %v191_v39 }
  0x2b   :  { %195 = vmax.xlane.f32.xlu0 %v194_v42  ;;  %198 = vmax.xlane.f32.xlu1 %v197_v43 }
  0x2f   :  { %201 = vmax.xlane.f32.xlu0 %v200_v46  ;;  %204 = vmax.xlane.f32.xlu1 %v203_v47 }
  0x33   :  { %207 = vmax.xlane.f32.xlu0 %v206_v50  ;;  %210 = vmax.xlane.f32.xlu1 %v209_v51 }
  0x37   :  { %213 = vmax.xlane.f32.xlu0 %v212_v54  ;;  %216 = vmax.xlane.f32.xlu1 %v215_v55 }
  0x3b   :  { %219 = vmax.xlane.f32.xlu0 %v218_v58  ;;  %222 = vmax.xlane.f32.xlu1 %v221_v59 }
  0x3f   :  { %225 = vmax.xlane.f32.xlu0 %v224_v62  ;;  %228 = vmax.xlane.f32.xlu1 %v227_v63 }
  0x8c   :  { %v2432_v6 = vpop.xlane.xlu0 %135  ;;  %v2434_v7 = vpop.xlane.xlu1 %141 }
  0x8d   :  { %vm488_vm1 = vcmp.ge.f32.partialorder %v2208_v0, %v2432_v6  ;;  %vm490_vm2 = vcmp.ge.f32.partialorder %v2213_v1, %v2434_v7 }
  0x8e   :  { %v520_v10 = vsel %vm488_vm1, %v2430_v4, 16  ;;  %v522_v11 = vsel %vm490_vm2, %v2430_v4, 16 }
  0x8f   :  { %v2443_v14 = vsel %vm133_vm0, %v520_v10, 2147483647  ;;  %v2451_v22 = vsel %vm133_vm0, %v522_v11, 2147483647 }
  0x90   :  { %v2445_v15 = vpop.xlane.xlu0 %138  ;;  %v2447_v18 = vpop.xlane.xlu1 %144  ;;  %v554_v19 = vshra.s32 %v2443_v14, 16  ;;  %v584_v26 = vshra.s32 %v2451_v22, 16 }
  0x91   :  { %vm489_vm3 = vcmp.ge.f32.partialorder %v2218_v2, %v2445_v15  ;;  %vm491_vm4 = vcmp.ge.f32.partialorder %v2227_v5, %v2447_v18 }
  0x92   :  { %v2457_v23 = vcvt.s32.f32 %v554_v19  ;;  %v521_v27 = vsel %vm489_vm3, %v2430_v4, 16  ;;  %v523_v35 = vsel %vm491_vm4, %v2430_v4, 16  ;;  %v2472_v38 = vcvt.s32.f32 %v584_v26 }
  0x93   :  { %v2467_v34 = vsel %vm133_vm0, %v521_v27, 2147483647  ;;  %v2476_v42 = vsel %vm133_vm0, %v523_v35, 2147483647 }
  0x94   :  { %557 = vmin.xlane.f32.xlu0 %v2457_v23  ;;  %v2462_v30 = vpop.xlane.xlu0 %147  ;;  %v2464_v31 = vpop.xlane.xlu1 %150  ;;  %v569_v39 = vshra.s32 %v2467_v34, 16  ;;  %v599_v50 = vshra.s32 %v2476_v42, 16 }
  0x95   :  { %vm492_vm5 = vcmp.ge.f32.partialorder %v2236_v8, %v2462_v30  ;;  %vm493_vm6 = vcmp.ge.f32.partialorder %v2241_v9, %v2464_v31 }
  0x96   :  { %v2479_v43 = vcvt.s32.f32 %v569_v39  ;;  %v524_v51 = vsel %vm492_vm5, %v2430_v4, 16  ;;  %v2494_v54 = vcvt.s32.f32 %v599_v50  ;;  %v525_v63 = vsel %vm493_vm6, %v2430_v4, 16 }
  0x97   :  { %v2497_v55 = vsel %vm133_vm0, %v524_v51, 2147483647  ;;  %v2511_v26 = vsel %vm133_vm0, %v525_v63, 2147483647 }
  0x98   :  { %587 = vmin.xlane.f32.xlu0 %v2472_v38  ;;  %3933 = vst [vmem:[#allocation11_spill] sm:$0xff] %v2479_v43  ;;  %v2481_v46 = vpop.xlane.xlu0 %153  ;;  %v2483_v47 = vpop.xlane.xlu1 %156  ;;  %572 = vmin.xlane.f32.xlu1 %v2479_v43  ;;  %3934 = vst [vmem:[#allocation12_spill] sm:$0xff] %v2494_v54  ;;  %v614_v58 = vshra.s32 %v2497_v55, 16  ;;  %v629_v27 = vshra.s32 %v2511_v26, 16 }
  0x99   :  { %vm494_vm7 = vcmp.ge.f32.partialorder %v2250_v12, %v2481_v46  ;;  %vm495_vm8 = vcmp.ge.f32.partialorder %v2255_v13, %v2483_v47  ;;  %3936 = vst [vmem:[#allocation14_spill] sm:$0xff] %v2511_v26 }
  0x9a   :  { %v526_v10 = vsel %vm494_vm7, %v2430_v4, 16  ;;  %v2506_v11 = vcvt.s32.f32 %v614_v58  ;;  %v527_v19 = vsel %vm495_vm8, %v2430_v4, 16  ;;  %v2530_v63 = vcvt.s32.f32 %v629_v27 }
  0x9b   :  { %v2516_v35 = vsel %vm133_vm0, %v526_v10, 2147483647  ;;  %v2526_v58 = vsel %vm133_vm0, %v527_v19, 2147483647  ;;  %v230_v19 = vsub.f32 %v2208_v0, %v2432_v6  ;;  %v232_v0 = vsub.f32 %v2213_v1, %v2434_v7 }
  0x9c   :  { %v2500_v59 = vpop.xlane.xlu0 %159  ;;  %v2502_v62 = vpop.xlane.xlu1 %162  ;;  %3935 = vst [vmem:[#allocation13_spill] sm:$0xff] %v2506_v11  ;;  %602 = vmin.xlane.f32.xlu1 %v2494_v54  ;;  %617 = vmin.xlane.f32.xlu0 %v2506_v11  ;;  %3937 = vst [vmem:[#allocation15_spill] sm:$0xff] %v2516_v35  ;;  %v644_v39 = vshra.s32 %v2516_v35, 16  ;;  %v659_v3 = vshra.s32 %v2526_v58, 16  ;;  %v231_v6 = vsub.f32 %v2218_v2, %v2445_v15 }
  0x9d   :  { %vm496_vm9 = vcmp.ge.f32.partialorder %v2264_v16, %v2500_v59  ;;  %3938 = vst [vmem:[#allocation16_spill] sm:$0xff] %v2526_v58  ;;  %vm497_vm10 = vcmp.ge.f32.partialorder %v2269_v17, %v2502_v62  ;;  %3939 = vst [vmem:[#allocation17_spill] sm:$0xff] %v2530_v63 }
  0x9e   :  { %v2534_v10 = vcvt.s32.f32 %v644_v39  ;;  %v528_v11 = vsel %vm496_vm9, %v2430_v4, 16  ;;  %v529_v39 = vsel %vm497_vm10, %v2430_v4, 16  ;;  %v2551_v26 = vcvt.s32.f32 %v659_v3 }
  0x9f   :  { %v2543_v35 = vsel %vm133_vm0, %v528_v11, 2147483647  ;;  %v262_v3 = vmul.f32 1.442695, %v230_v19 }
  0xa0   :  { %v2521_v50 = vpop.xlane.xlu0 %165  ;;  %v2523_v51 = vpop.xlane.xlu1 %168  ;;  %3940 = vst [vmem:[#allocation18_spill] sm:$0xff] %v2534_v10  ;;  %632 = vmin.xlane.f32.xlu1 %v2530_v63  ;;  %647 = vmin.xlane.f32.xlu0 %v2534_v10  ;;  %3941 = vst [vmem:[#allocation19_spill] sm:$0xff] %v2543_v35  ;;  %v674_v58 = vshra.s32 %v2543_v35, 16  ;;  %v2562_v10 = vsel %vm133_vm0, %v529_v39, 2147483647  ;;  %v233_v35 = vsub.f32 %v2227_v5, %v2447_v18 }
  0xa1   :  { %vm498_vm11 = vcmp.ge.f32.partialorder %v2278_v20, %v2521_v50  ;;  %vm499_vm12 = vcmp.ge.f32.partialorder %v2283_v21, %v2523_v51  ;;  %v689_v1 = vshra.s32 %v2562_v10, 16  ;;  %v264_v18 = vmul.f32 1.442695, %v231_v6 }
  0xa2   :  { %v530_v63 = vsel %vm498_vm11, %v2430_v4, 16  ;;  %v2559_v11 = vcvt.s32.f32 %v674_v58  ;;  %v266_v58 = vmul.f32 1.442695, %v232_v0  ;;  %v531_v39 = vsel %vm499_vm12, %v2430_v4, 16 }
  0xa3   :  { %v2565_v43 = vsel %vm133_vm0, %v530_v63, 2147483647  ;;  %v2582_v5 = vcvt.s32.f32 %v689_v1  ;;  %v234_v63 = vsub.f32 %v2236_v8, %v2462_v30  ;;  %1978 = vpow2.f32 %v262_v3 }
  0xa4   :  { %v2545_v27 = vpop.xlane.xlu0 %171  ;;  %v2547_v54 = vpop.xlane.xlu1 %174  ;;  %662 = vmin.xlane.f32.xlu1 %v2551_v26  ;;  %3942 = vst [vmem:[#allocation20_spill] sm:$0xff] %v2559_v11  ;;  %3943 = vst [vmem:[#allocation21_spill] sm:$0xff] %v2565_v43  ;;  %677 = vmin.xlane.f32.xlu0 %v2559_v11  ;;  %v704_v7 = vshra.s32 %v2565_v43, 16  ;;  %v268_v11 = vmul.f32 1.442695, %v233_v35  ;;  %1980 = vpow2.f32 %v266_v58  ;;  %v235_v3 = vsub.f32 %v2241_v9, %v2464_v31 }
  0xa5   :  { %vm500_vm13 = vcmp.ge.f32.partialorder %v2292_v24, %v2545_v27  ;;  %vm501_vm14 = vcmp.ge.f32.partialorder %v2297_v25, %v2547_v54  ;;  %v2591_v43 = vsel %vm133_vm0, %v531_v39, 2147483647  ;;  %1982 = vpow2.f32 %v264_v18 }
  0xa6   :  { %v2586_v19 = vcvt.s32.f32 %v704_v7  ;;  %v532_v0 = vsel %vm500_vm13, %v2430_v4, 16  ;;  %v719_v8 = vshra.s32 %v2591_v43, 16  ;;  %v533_v35 = vsel %vm501_vm14, %v2430_v4, 16 }
  0xa7   :  { %v2599_v30 = vsel %vm133_vm0, %v532_v0, 2147483647  ;;  %v270_v7 = vmul.f32 1.442695, %v234_v63  ;;  %v2621_v58 = vsel %vm133_vm0, %v533_v35, 2147483647  ;;  %1984 = vpow2.f32 %v268_v11 }
  0xa8   :  { %v2572_v2 = vpop.xlane.xlu0 %177  ;;  %v2578_v15 = vpop.xlane.xlu1 %180  ;;  %3944 = vst [vmem:[#allocation22_spill] sm:$0xff] %v2586_v19  ;;  %692 = vmin.xlane.f32.xlu1 %v2582_v5  ;;  %707 = vmin.xlane.f32.xlu0 %v2586_v19  ;;  %v734_v1 = vshra.s32 %v2599_v30, 16  ;;  %v2612_v39 = vcvt.s32.f32 %v719_v8  ;;  %v236_v31 = vsub.f32 %v2250_v12, %v2481_v46  ;;  %v749_v18 = vshra.s32 %v2621_v58, 16 }
  0xa9   :  { %vm502_vm15 = vcmp.ge.f32.partialorder %v2306_v28, %v2572_v2  ;;  %vm503_vm1 = vcmp.ge.f32.partialorder %v2311_v29, %v2578_v15  ;;  %v272_v8 = vmul.f32 1.442695, %v235_v3  ;;  %1986 = vpow2.f32 %v270_v7 }
  0xaa   :  { %3945 = vst [vmem:[#allocation23_spill] sm:$0xff] %v2612_v39  ;;  %v2616_v19 = vcvt.s32.f32 %v734_v1  ;;  %v534_v9 = vsel %vm502_vm15, %v2430_v4, 16  ;;  %v535_v12 = vsel %vm503_vm1, %v2430_v4, 16  ;;  %v2642_v46 = vcvt.s32.f32 %v749_v18 }
  0xab   :  { %v2632_v63 = vsel %vm133_vm0, %v534_v9, 2147483647  ;;  %v2645_v11 = vsel %vm133_vm0, %v535_v12, 2147483647  ;;  %v237_v1 = vsub.f32 %v2255_v13, %v2483_v47  ;;  %v274_v7 = vmul.f32 1.442695, %v236_v31 }
  0xac   :  { %v2601_v6 = vpop.xlane.xlu0 %183  ;;  %v2614_v0 = vpop.xlane.xlu1 %186  ;;  %3946 = vst [vmem:[#allocation24_spill] sm:$0xff] %v2616_v19  ;;  %722 = vmin.xlane.f32.xlu1 %v2612_v39  ;;  %3947 = vst [vmem:[#allocation25_spill] sm:$0xff] %v2632_v63  ;;  %737 = vmin.xlane.f32.xlu0 %v2616_v19  ;;  %v764_v35 = vshra.s32 %v2632_v63, 16  ;;  %v779_v19 = vshra.s32 %v2645_v11, 16  ;;  %v238_v18 = vsub.f32 %v2264_v16, %v2500_v59  ;;  %1988 = vpow2.f32 %v272_v8 }
  0xad   :  { %vm504_vm2 = vcmp.ge.f32.partialorder %v2320_v32, %v2601_v6  ;;  %vm505_vm3 = vcmp.ge.f32.partialorder %v2325_v33, %v2614_v0  ;;  %3948 = vst [vmem:[#allocation26_spill] sm:$0xff] %v2642_v46  ;;  %v239_v16 = vsub.f32 %v2269_v17, %v2502_v62  ;;  %1990 = vpow2.f32 %v274_v7 }
  0xae   :  { %v536_v3 = vsel %vm504_vm2, %v2430_v4, 16  ;;  %v2653_v9 = vcvt.s32.f32 %v764_v35  ;;  %v537_v63 = vsel %vm505_vm3, %v2430_v4, 16  ;;  %v2665_v13 = vcvt.s32.f32 %v779_v19 }
  0xaf   :  { %v2657_v39 = vsel %vm133_vm0, %v536_v3, 2147483647  ;;  %v2668_v47 = vsel %vm133_vm0, %v537_v63, 2147483647  ;;  %v276_v3 = vmul.f32 1.442695, %v237_v1  ;;  %v241_v17 = vsub.f32 %v2283_v21, %v2523_v51 }
  0xb0   :  { %3949 = vst [vmem:[#allocation27_spill] sm:$0xff] %v2653_v9  ;;  %752 = vmin.xlane.f32.xlu1 %v2642_v46  ;;  %v794_v12 = vshra.s32 %v2657_v39, 16  ;;  %767 = vmin.xlane.f32.xlu0 %v2653_v9  ;;  %v809_v31 = vshra.s32 %v2668_v47, 16  ;;  %v1979_v59 = vpop.eup %1978  ;;  %v278_v46 = vmul.f32 1.442695, %v238_v18  ;;  %v240_v9 = vsub.f32 %v2278_v20, %v2521_v50  ;;  %v2681_v63 = vpop.xlane.xlu0 %189 }
  0xb1   :  { %1992 = vpow2.f32 %v276_v3  ;;  %v280_v1 = vmul.f32 1.442695, %v239_v16  ;;  %v242_v20 = vsub.f32 %v2292_v24, %v2545_v27  ;;  %v326_v50 = vsel %vm133_vm0, %v1979_v59, 0.0  ;;  %v2689_v7 = vpop.xlane.xlu1 %192 }
  0xb2   :  { %v2670_v35 = vcvt.s32.f32 %v794_v12  ;;  %v2678_v19 = vcvt.s32.f32 %v809_v31  ;;  %v1981_v12 = vpop.eup %1980  ;;  %1994 = vpow2.f32 %v278_v46  ;;  %v282_v62 = vmul.f32 1.442695, %v240_v9 }
  0xb3   :  { %v1983_v8 = vpop.eup %1982  ;;  %1996 = vpow2.f32 %v280_v1  ;;  %v284_v3 = vmul.f32 1.442695, %v241_v17  ;;  %v243_v16 = vsub.f32 %v2297_v25, %v2547_v54  ;;  %v286_v24 = vmul.f32 1.442695, %v242_v20 }
  0xb4   :  { %782 = vmin.xlane.f32.xlu1 %v2665_v13  ;;  %797 = vmin.xlane.f32.xlu0 %v2670_v35  ;;  %v1985_v18 = vpop.eup %1984  ;;  %v329_v21 = vsel %vm133_vm0, %v1983_v8, 0.0  ;;  %v2694_v51 = vpop.xlane.xlu0 %195  ;;  %1998 = vpow2.f32 %v282_v62  ;;  %v244_v27 = vsub.f32 %v2306_v28, %v2572_v2  ;;  %v332_v46 = vsel %vm133_vm0, %v1981_v12, 0.0 }
  0xb5   :  { %v2699_v9 = vpop.xlane.xlu1 %198  ;;  %2000 = vpow2.f32 %v284_v3  ;;  %v288_v59 = vmul.f32 1.442695, %v243_v16  ;;  %v245_v25 = vsub.f32 %v2311_v29, %v2578_v15  ;;  %v335_v54 = vsel %vm133_vm0, %v1985_v18, 0.0 }
  0xb6   :  { %v1987_v31 = vpop.eup %1986  ;;  %2002 = vpow2.f32 %v286_v24  ;;  %v290_v1 = vmul.f32 1.442695, %v244_v27  ;;  %v246_v17 = vsub.f32 %v2320_v32, %v2601_v6  ;;  %v248_v62 = vsub.f32 %v2334_v36, %v2681_v63 }
  0xb7   :  { %v338_v28 = vsel %vm133_vm0, %v1987_v31, 0.0  ;;  %2004 = vpow2.f32 %v288_v59  ;;  %v292_v29 = vmul.f32 1.442695, %v245_v25  ;;  %v247_v15 = vsub.f32 %v2325_v33, %v2614_v0 }
  0xb8   :  { %812 = vmin.xlane.f32.xlu1 %v2678_v19  ;;  %327 = vadd.xlane.f32.xlu0 %v326_v50  ;;  %v2707_v12 = vpop.xlane.xlu0 %201  ;;  %2006 = vpow2.f32 %v290_v1  ;;  %v294_v32 = vmul.f32 1.442695, %v246_v17  ;;  %v249_v3 = vsub.f32 %v2339_v37, %v2689_v7  ;;  %v298_v16 = vmul.f32 1.442695, %v248_v62 }
  0xb9   :  { %v1989_v8 = vpop.eup %1988  ;;  %v2715_v18 = vpop.xlane.xlu1 %204  ;;  %2008 = vpow2.f32 %v292_v29  ;;  %v296_v33 = vmul.f32 1.442695, %v247_v15  ;;  %v252_v1 = vsub.f32 %v2362_v44, %v2707_v12  ;;  %vm506_vm4 = vcmp.ge.f32.partialorder %v2334_v36, %v2681_v63 }
  0xba   :  { %v1991_v2 = vpop.eup %1990  ;;  %v341_v20 = vsel %vm133_vm0, %v1989_v8, 0.0  ;;  %2010 = vpow2.f32 %v294_v32  ;;  %v300_v25 = vmul.f32 1.442695, %v249_v3  ;;  %vm507_vm5 = vcmp.ge.f32.partialorder %v2339_v37, %v2689_v7 }
  0xbb   :  { %v344_v6 = vsel %vm133_vm0, %v1991_v2, 0.0  ;;  %2012 = vpow2.f32 %v298_v16  ;;  %v306_v32 = vmul.f32 1.442695, %v252_v1  ;;  %vm508_vm6 = vcmp.ge.f32.partialorder %v2348_v40, %v2694_v51 }
  0xbc   :  { %330 = vadd.xlane.f32.xlu1 %v329_v21  ;;  %333 = vadd.xlane.f32.xlu0 %v332_v46  ;;  %v250_v21 = vsub.f32 %v2348_v40, %v2694_v51  ;;  %v2722_v24 = vpop.xlane.xlu0 %207  ;;  %2014 = vpow2.f32 %v296_v33  ;;  %v539_v63 = vsel %vm507_vm5, %v2430_v4, 16  ;;  %vm509_vm7 = vcmp.ge.f32.partialorder %v2353_v41, %v2699_v9 }
  0xbd   :  { %v2729_v17 = vpop.xlane.xlu1 %210  ;;  %2016 = vpow2.f32 %v300_v25  ;;  %v540_v7 = vsel %vm508_vm6, %v2430_v4, 16  ;;  %vm510_vm8 = vcmp.ge.f32.partialorder %v2362_v44, %v2707_v12  ;;  %vm511_vm9 = vcmp.ge.f32.partialorder %v2367_v45, %v2715_v18 }
  0xbe   :  { %v1993_v50 = vpop.eup %1992  ;;  %v302_v8 = vmul.f32 1.442695, %v250_v21  ;;  %v542_v44 = vsel %vm510_vm8, %v2430_v4, 16  ;;  %vm512_vm10 = vcmp.ge.f32.partialorder %v2376_v48, %v2722_v24  ;;  %vm513_vm11 = vcmp.ge.f32.partialorder %v2381_v49, %v2729_v17 }
  0xbf   :  { %v1995_v31 = vpop.eup %1994  ;;  %v347_v0 = vsel %vm133_vm0, %v1993_v50, 0.0 }
  0xc0   :  { %336 = vadd.xlane.f32.xlu1 %v335_v54  ;;  %339 = vadd.xlane.f32.xlu0 %v338_v28  ;;  %v1997_v27 = vpop.eup %1996  ;;  %v350_v46 = vsel %vm133_vm0, %v1995_v31, 0.0  ;;  %v251_v54 = vsub.f32 %v2353_v41, %v2699_v9  ;;  %v2735_v50 = vpop.xlane.xlu0 %213  ;;  %2018 = vpow2.f32 %v302_v8  ;;  %v541_v41 = vsel %vm509_vm7, %v2430_v4, 16 }
  0xc1   :  { %v1999_v59 = vpop.eup %1998  ;;  %v353_v28 = vsel %vm133_vm0, %v1997_v27, 0.0  ;;  %v2741_v21 = vpop.xlane.xlu1 %216  ;;  %v255_v27 = vsub.f32 %v2381_v49, %v2729_v17  ;;  %vm514_vm12 = vcmp.ge.f32.partialorder %v2390_v52, %v2735_v50 }
  0xc2   :  { %v2001_v2 = vpop.eup %2000  ;;  %v356_v62 = vsel %vm133_vm0, %v1999_v59, 0.0  ;;  %v304_v15 = vmul.f32 1.442695, %v251_v54  ;;  %v256_v59 = vsub.f32 %v2390_v52, %v2735_v50  ;;  %v545_v52 = vsel %vm513_vm11, %v2430_v4, 16 }
  0xc3   :  { %v2003_v29 = vpop.eup %2002  ;;  %v359_v31 = vsel %vm133_vm0, %v2001_v2, 0.0  ;;  %v312_v2 = vmul.f32 1.442695, %v255_v27  ;;  %vm515_vm13 = vcmp.ge.f32.partialorder %v2395_v53, %v2741_v21 }
  0xc4   :  { %342 = vadd.xlane.f32.xlu1 %v341_v20  ;;  %345 = vadd.xlane.f32.xlu0 %v344_v6  ;;  %v253_v20 = vsub.f32 %v2367_v45, %v2715_v18  ;;  %v254_v6 = vsub.f32 %v2376_v48, %v2722_v24  ;;  %v2005_v3 = vpop.eup %2004  ;;  %v362_v16 = vsel %vm133_vm0, %v2003_v29, 0.0  ;;  %2020 = vpow2.f32 %v304_v15  ;;  %v2748_v54 = vpop.xlane.xlu0 %219 }
  0xc5   :  { %v2007_v33 = vpop.eup %2006  ;;  %2022 = vpow2.f32 %v306_v32  ;;  %v365_v25 = vsel %vm133_vm0, %v2005_v3, 0.0  ;;  %v314_v29 = vmul.f32 1.442695, %v256_v59  ;;  %v258_v15 = vsub.f32 %v2404_v56, %v2748_v54 }
  0xc6   :  { %v2009_v8 = vpop.eup %2008  ;;  %v368_v1 = vsel %vm133_vm0, %v2007_v33, 0.0  ;;  %v2811_v45 = vsel %vm133_vm0, %v542_v44, 2147483647  ;;  %v543_v18 = vsel %vm511_vm9, %v2430_v4, 16  ;;  %v544_v48 = vsel %vm512_vm10, %v2430_v4, 16 }
  0xc7   :  { %v2828_v49 = vsel %vm133_vm0, %v543_v18, 2147483647  ;;  %v2832_v17 = vsel %vm133_vm0, %v544_v48, 2147483647  ;;  %vm516_vm14 = vcmp.ge.f32.partialorder %v2404_v56, %v2748_v54  ;;  %v547_v56 = vsel %vm515_vm13, %v2430_v4, 16 }
  0xc8   :  { %348 = vadd.xlane.f32.xlu1 %v347_v0  ;;  %351 = vadd.xlane.f32.xlu0 %v350_v46  ;;  %v308_v0 = vmul.f32 1.442695, %v253_v20  ;;  %v310_v46 = vmul.f32 1.442695, %v254_v6  ;;  %v2755_v20 = vpop.xlane.xlu1 %222  ;;  %v371_v6 = vsel %vm133_vm0, %v2009_v8, 0.0 }
  0xc9   :  { %v259_v33 = vsub.f32 %v2409_v57, %v2755_v20  ;;  %vm517_vm1 = vcmp.ge.f32.partialorder %v2409_v57, %v2755_v20 }
  0xca   :  { %2024 = vpow2.f32 %v308_v0 }
  0xcb   :  { %2026 = vpow2.f32 %v310_v46  ;;  %v318_v46 = vmul.f32 1.442695, %v258_v15  ;;  %v320_v8 = vmul.f32 1.442695, %v259_v33 }
  0xcc   :  { %354 = vadd.xlane.f32.xlu1 %v353_v28  ;;  %357 = vadd.xlane.f32.xlu0 %v356_v62  ;;  %v2011_v28 = vpop.eup %2010  ;;  %v257_v62 = vsub.f32 %v2395_v53, %v2741_v21  ;;  %2028 = vpow2.f32 %v312_v2  ;;  %v2849_v53 = vsel %vm133_vm0, %v545_v52, 2147483647 }
  0xcd   :  { %v2013_v32 = vpop.eup %2012  ;;  %v374_v3 = vsel %vm133_vm0, %v2011_v28, 0.0  ;;  %2030 = vpow2.f32 %v314_v29 }
  0xce   :  { %v380_v27 = vsel %vm133_vm0, %v2013_v32, 0.0 }
  0xd0   :  { %360 = vadd.xlane.f32.xlu1 %v359_v31  ;;  %363 = vadd.xlane.f32.xlu0 %v362_v16  ;;  %v2015_v31 = vpop.eup %2014  ;;  %v316_v16 = vmul.f32 1.442695, %v257_v62 }
  0xd1   :  { %v2017_v0 = vpop.eup %2016 }
  0xd2   :  { %v2019_v59 = vpop.eup %2018  ;;  %2032 = vpow2.f32 %v316_v16 }
  0xd3   :  { %v2021_v28 = vpop.eup %2020  ;;  %2034 = vpow2.f32 %v318_v46  ;;  %v386_v2 = vsel %vm133_vm0, %v2019_v59, 0.0 }
  0xd4   :  { %366 = vadd.xlane.f32.xlu1 %v365_v25  ;;  %369 = vadd.xlane.f32.xlu0 %v368_v1  ;;  %v377_v25 = vsel %vm133_vm0, %v2015_v31, 0.0  ;;  %v383_v1 = vsel %vm133_vm0, %v2017_v0, 0.0  ;;  %v2023_v62 = vpop.eup %2022  ;;  %2036 = vpow2.f32 %v320_v8  ;;  %v389_v29 = vsel %vm133_vm0, %v2021_v28, 0.0 }
  0xd5   :  { %v392_v32 = vsel %vm133_vm0, %v2023_v62, 0.0  ;;  %v2794_v28 = vsel %vm133_vm0, %v540_v7, 2147483647 }
  0xd6   :  { %v854_v62 = vshra.s32 %v2794_v28, 16 }
  0xd7   :  { %v2025_v15 = vpop.eup %2024 }
  0xd8   :  { %372 = vadd.xlane.f32.xlu1 %v371_v6  ;;  %375 = vadd.xlane.f32.xlu0 %v374_v3  ;;  %v2027_v6 = vpop.eup %2026  ;;  %v395_v31 = vsel %vm133_vm0, %v2025_v15, 0.0  ;;  %v226_v15 = vpop.xlane.xlu0 %225 }
  0xd9   :  { %v2029_v3 = vpop.eup %2028  ;;  %v398_v16 = vsel %vm133_vm0, %v2027_v6, 0.0  ;;  %v260_v6 = vsub.f32 %v2418_v60, %v226_v15  ;;  %vm518_vm15 = vcmp.ge.f32.partialorder %v2418_v60, %v226_v15  ;;  %v929_v60 = vshra.s32 %v2849_v53, 16 }
  0xda   :  { %v2031_v33 = vpop.eup %2030  ;;  %v401_v0 = vsel %vm133_vm0, %v2029_v3, 0.0  ;;  %v2824_v3 = vcvt.s32.f32 %v854_v62  ;;  %v550_v57 = vsel %vm518_vm15, %v2430_v4, 16 }
  0xdb   :  { %v404_v59 = vsel %vm133_vm0, %v2031_v33, 0.0  ;;  %v546_v33 = vsel %vm514_vm12, %v2430_v4, 16 }
  0xdc   :  { %378 = vadd.xlane.f32.xlu1 %v377_v25  ;;  %381 = vadd.xlane.f32.xlu0 %v380_v27  ;;  %v538_v27 = vsel %vm506_vm4, %v2430_v4, 16  ;;  %v2854_v21 = vsel %vm133_vm0, %v546_v33, 2147483647 }
  0xdd   :  { %v2779_v36 = vsel %vm133_vm0, %v538_v27, 2147483647  ;;  %v322_v27 = vmul.f32 1.442695, %v260_v6 }
  0xde   :  { %v824_v51 = vshra.s32 %v2779_v36, 16 }
  0xdf   :  { %v2033_v46 = vpop.eup %2032  ;;  %2038 = vpow2.f32 %v322_v27 }
  0xe0   :  { %384 = vadd.xlane.f32.xlu1 %v383_v1  ;;  %387 = vadd.xlane.f32.xlu0 %v386_v2  ;;  %v2035_v25 = vpop.eup %2034  ;;  %v407_v37 = vsel %vm133_vm0, %v2033_v46, 0.0  ;;  %v2791_v1 = vsel %vm133_vm0, %v539_v63, 2147483647  ;;  %v2804_v2 = vcvt.s32.f32 %v824_v51  ;;  %v899_v46 = vshra.s32 %v2828_v49, 16 }
  0xe1   :  { %v2037_v8 = vpop.eup %2036  ;;  %v410_v40 = vsel %vm133_vm0, %v2035_v25, 0.0  ;;  %v839_v12 = vshra.s32 %v2791_v1, 16  ;;  %v914_v25 = vshra.s32 %v2832_v17, 16  ;;  %v548_v63 = vsel %vm516_vm14, %v2430_v4, 16 }
  0xe2   :  { %v413_v9 = vsel %vm133_vm0, %v2037_v8, 0.0  ;;  %v944_v8 = vshra.s32 %v2854_v21, 16  ;;  %v2874_v20 = vsel %vm133_vm0, %v548_v63, 2147483647  ;;  %v2878_v51 = vcvt.s32.f32 %v929_v60 }
  0xe3   :  { %v2820_v24 = vcvt.s32.f32 %v839_v12  ;;  %v2865_v7 = vcvt.s32.f32 %v914_v25  ;;  %v974_v62 = vshra.s32 %v2874_v20, 16  ;;  %v583_v63 = vand.u32 65535, %v2451_v22 }
  0xe4   :  { %390 = vadd.xlane.f32.xlu1 %v389_v29  ;;  %393 = vadd.xlane.f32.xlu0 %v392_v32  ;;  %v2808_v29 = vsel %vm133_vm0, %v541_v41, 2147483647  ;;  %v2885_v12 = vcvt.s32.f32 %v944_v8 }
  0xe5   :  { %v869_v32 = vshra.s32 %v2808_v29, 16 }
  0xe8   :  { %396 = vadd.xlane.f32.xlu1 %v395_v31  ;;  %399 = vadd.xlane.f32.xlu0 %v398_v16  ;;  %v229_v31 = vpop.xlane.xlu1 %228  ;;  %v884_v16 = vshra.s32 %v2811_v45, 16 }
  0xe9   :  { %v261_v50 = vsub.f32 %v2423_v61, %v229_v31  ;;  %vm519_vm2 = vcmp.ge.f32.partialorder %v2423_v61, %v229_v31  ;;  %v549_v61 = vsel %vm517_vm1, %v2430_v4, 16  ;;  %v2900_v31 = vcvt.s32.f32 %v974_v62 }
  0xea   :  { %v551_v44 = vsel %vm519_vm2, %v2430_v4, 16  ;;  %v2889_v15 = vsel %vm133_vm0, %v549_v61, 2147483647  ;;  %v568_v61 = vand.u32 65535, %v2467_v34 }
  0xeb   :  { %v324_v54 = vmul.f32 1.442695, %v261_v50  ;;  %v2895_v48 = vsel %vm133_vm0, %v551_v44, 2147483647  ;;  %v989_v6 = vshra.s32 %v2889_v15, 16  ;;  %v585_v44 = vcvt.s32.f32 %v583_v63 }
  0xec   :  { %402 = vadd.xlane.f32.xlu1 %v401_v0  ;;  %405 = vadd.xlane.f32.xlu0 %v404_v59  ;;  %v2842_v0 = vcvt.s32.f32 %v869_v32  ;;  %v2845_v59 = vcvt.s32.f32 %v884_v16  ;;  %3950 = vst [vmem:[#allocation28_spill] sm:$0xff] %v2895_v48  ;;  %v1019_v16 = vshra.s32 %v2895_v48, 16  ;;  %v2039_v33 = vpop.eup %2038  ;;  %v570_v22 = vcvt.s32.f32 %v568_v61  ;;  %v3962_v61 = vld [vmem:[#allocation16_spill] sm:$0xff] }
  0xed   :  { %2040 = vpow2.f32 %v324_v54  ;;  %v2907_v50 = vcvt.s32.f32 %v989_v6  ;;  %v416_v25 = vsel %vm133_vm0, %v2039_v33, 0.0  ;;  %v553_v54 = vand.u32 65535, %v2443_v14 }
  0xee   :  { %v2910_v27 = vcvt.s32.f32 %v1019_v16  ;;  %v598_v14 = vand.u32 65535, %v2476_v42  ;;  %v613_v6 = vand.u32 65535, %v2497_v55  ;;  %v3959_v42 = vld [vmem:[#allocation12_spill] sm:$0xff] }
  0xef   :  { %v555_v8 = vcvt.s32.f32 %v553_v54  ;;  %v3960_v54 = vld [vmem:[#allocation15_spill] sm:$0xff] }
  0xf0   :  { %408 = vadd.xlane.f32.xlu1 %v407_v37  ;;  %411 = vadd.xlane.f32.xlu0 %v410_v40  ;;  %v2862_v37 = vcvt.s32.f32 %v899_v46  ;;  %v2869_v40 = vsel %vm133_vm0, %v547_v56, 2147483647  ;;  %3951 = vst [vmem:[#allocation29_spill] sm:$0xff] %v2910_v27  ;;  %v600_v33 = vcvt.s32.f32 %v598_v14  ;;  %v643_v63 = vand.u32 65535, %v3960_v54 }
  0xf1   :  { %v959_v41 = vshra.s32 %v2869_v40, 16 }
  0xf3   :  { %v2897_v32 = vcvt.s32.f32 %v959_v41 }
  0xf4   :  { %414 = vadd.xlane.f32.xlu1 %v413_v9  ;;  %827 = vmin.xlane.f32.xlu0 %v2804_v2  ;;  %v2882_v9 = vsel %vm133_vm0, %v550_v57, 2147483647 }
  0xf5   :  { %v1004_v18 = vshra.s32 %v2882_v9, 16 }
  0xf7   :  { %v2905_v52 = vcvt.s32.f32 %v1004_v18 }
  0xf8   :  { %842 = vmin.xlane.f32.xlu1 %v2820_v24  ;;  %857 = vmin.xlane.f32.xlu0 %v2824_v3 }
  0xfa   :  { %v2041_v46 = vpop.eup %2040 }
  0xfb   :  { %v419_v56 = vsel %vm133_vm0, %v2041_v46, 0.0  ;;  %v3957_v46 = vld [vmem:[#allocation14_spill] sm:$0xff] }
  0xfc   :  { %872 = vmin.xlane.f32.xlu1 %v2842_v0  ;;  %887 = vmin.xlane.f32.xlu0 %v2845_v59 }
 0x100   :  { %902 = vmin.xlane.f32.xlu1 %v2862_v37  ;;  %917 = vmin.xlane.f32.xlu0 %v2865_v7 }
 0x104   :  { %932 = vmin.xlane.f32.xlu1 %v2878_v51  ;;  %947 = vmin.xlane.f32.xlu0 %v2885_v12 }
 0x108   :  { %962 = vmin.xlane.f32.xlu1 %v2897_v32  ;;  %977 = vmin.xlane.f32.xlu0 %v2900_v31 }
 0x10c   :  { %992 = vmin.xlane.f32.xlu1 %v2907_v50  ;;  %1007 = vmin.xlane.f32.xlu0 %v2905_v52 }
 0x110   :  { %1022 = vmin.xlane.f32.xlu1 %v2910_v27  ;;  %417 = vadd.xlane.f32.xlu0 %v416_v25  ;;  %v628_v25 = vand.u32 65535, %v3957_v46 }
 0x114   :  { %420 = vadd.xlane.f32.xlu1 %v419_v56  ;;  %v615_v56 = vcvt.s32.f32 %v613_v6  ;;  %v645_v6 = vcvt.s32.f32 %v643_v63 }
 0x11d   :  { %v2918_v60 = vpop.xlane.xlu0 %557 }
 0x11e   :  { %3952 = vst [vmem:[#allocation30_spill] sm:$0xff] %v2918_v60  ;;  %vm559_vm3 = vcmp.eq.f32.partialorder %v2457_v23, %v2918_v60  ;;  %v3955_v23 = vld [vmem:[#allocation11_spill] sm:$0xff] }
 0x11f   :  { %v560_v57 = vsel %vm559_vm3, %v555_v8, inf  ;;  %v3961_v8 = vld [vmem:[#allocation13_spill] sm:$0xff] }
 0x120   :  { %561 = vmin.xlane.f32.xlu0 %v560_v57 }
 0x121   :  { %v2923_v41 = vpop.xlane.xlu0 %587  ;;  %v2928_v62 = vpop.xlane.xlu1 %572 }
 0x122   :  { %3953 = vst [vmem:[#allocation31_spill] sm:$0xff] %v2923_v41  ;;  %vm589_vm0 = vcmp.eq.f32.partialorder %v2472_v38, %v2923_v41  ;;  %3954 = vst [vmem:[#allocation32_spill] sm:$0xff] %v2928_v62  ;;  %vm574_vm4 = vcmp.eq.f32.partialorder %v3955_v23, %v2928_v62  ;;  %v3965_v23 = vld [vmem:[#allocation17_spill] sm:$0xff] }
 0x123   :  { %v590_v18 = vsel %vm589_vm0, %v585_v44, inf  ;;  %v575_v34 = vsel %vm574_vm4, %v570_v22, inf  ;;  %v658_v44 = vand.u32 65535, %v3962_v61  ;;  %v630_v22 = vcvt.s32.f32 %v628_v25 }
 0x124   :  { %591 = vmin.xlane.f32.xlu0 %v590_v18  ;;  %576 = vmin.xlane.f32.xlu1 %v575_v34  ;;  %v3966_v34 = vld [vmem:[#allocation19_spill] sm:$0xff]  ;;  %v688_v25 = vand.u32 65535, %v2562_v10  ;;  %v718_v10 = vand.u32 65535, %v2591_v43  ;;  %v748_v43 = vand.u32 65535, %v2621_v58 }
 0x125   :  { %v2933_v16 = vpop.xlane.xlu1 %602  ;;  %v2936_v38 = vpop.xlane.xlu0 %617  ;;  %v673_v46 = vand.u32 65535, %v3966_v34 }
 0x126   :  { %3956 = vst [vmem:[#allocation11_spill] sm:$0xff] %v2933_v16  ;;  %3958 = vst [vmem:[#allocation14_spill] sm:$0xff] %v2936_v38  ;;  %vm604_vm5 = vcmp.eq.f32.partialorder %v3959_v42, %v2933_v16  ;;  %vm619_vm6 = vcmp.eq.f32.partialorder %v3961_v8, %v2936_v38  ;;  %v3967_v42 = vld [vmem:[#allocation18_spill] sm:$0xff]  ;;  %v3969_v8 = vld [vmem:[#allocation21_spill] sm:$0xff] }
 0x127   :  { %v605_v55 = vsel %vm604_vm5, %v600_v33, inf  ;;  %v620_v57 = vsel %vm619_vm6, %v615_v56, inf }
 0x128   :  { %606 = vmin.xlane.f32.xlu1 %v605_v55  ;;  %621 = vmin.xlane.f32.xlu0 %v620_v57  ;;  %v660_v55 = vcvt.s32.f32 %v658_v44  ;;  %v703_v57 = vand.u32 65535, %v3969_v8  ;;  %v690_v44 = vcvt.s32.f32 %v688_v25  ;;  %v2170_v8 = vmov 0  }
 0x129   :  { %v2944_v14 = vpop.xlane.xlu1 %632  ;;  %v2946_v18 = vpop.xlane.xlu0 %647  ;;  %1971 = vset.pattern.permute.xlu0 %v2170_v8  ;;  %1977 = vset.pattern.permute.xlu1 %v2170_v8  ;;  %v3982_v8 = vld [vmem:[#allocation26_spill] sm:$0xff] }
 0x12a   :  { %3963 = vst [vmem:[#allocation12_spill] sm:$0xff] %v2944_v14  ;;  %3964 = vst [vmem:[#allocation15_spill] sm:$0xff] %v2946_v18  ;;  %vm634_vm7 = vcmp.eq.f32.partialorder %v3965_v23, %v2944_v14  ;;  %vm649_vm8 = vcmp.eq.f32.partialorder %v3967_v42, %v2946_v18  ;;  %v3971_v23 = vld [vmem:[#allocation20_spill] sm:$0xff]  ;;  %v733_v42 = vand.u32 65535, %v2599_v30  ;;  %v3978_v30 = vld [vmem:[#allocation23_spill] sm:$0xff] }
 0x12b   :  { %v635_v33 = vsel %vm634_vm7, %v630_v22, inf  ;;  %v650_v56 = vsel %vm649_vm8, %v645_v6, inf  ;;  %v675_v22 = vcvt.s32.f32 %v673_v46 }
 0x12c   :  { %636 = vmin.xlane.f32.xlu1 %v635_v33  ;;  %651 = vmin.xlane.f32.xlu0 %v650_v56  ;;  %v3974_v56 = vld [vmem:[#allocation22_spill] sm:$0xff] }
 0x12d   :  { %v2953_v54 = vpop.xlane.xlu1 %662  ;;  %v2959_v63 = vpop.xlane.xlu0 %677 }
 0x12e   :  { %3968 = vst [vmem:[#allocation13_spill] sm:$0xff] %v2953_v54  ;;  %vm664_vm9 = vcmp.eq.f32.partialorder %v2551_v26, %v2953_v54  ;;  %3970 = vst [vmem:[#allocation16_spill] sm:$0xff] %v2959_v63  ;;  %vm679_vm10 = vcmp.eq.f32.partialorder %v3971_v23, %v2959_v63  ;;  %v705_v26 = vcvt.s32.f32 %v703_v57  ;;  %v735_v23 = vcvt.s32.f32 %v733_v42 }
 0x12f   :  { %v665_v61 = vsel %vm664_vm9, %v660_v55, inf  ;;  %v680_v6 = vsel %vm679_vm10, %v675_v22, inf  ;;  %v3976_v22 = vld [vmem:[#allocation25_spill] sm:$0xff] }
 0x130   :  { %666 = vmin.xlane.f32.xlu1 %v665_v61  ;;  %681 = vmin.xlane.f32.xlu0 %v680_v6  ;;  %v720_v61 = vcvt.s32.f32 %v718_v10  ;;  %v750_v10 = vcvt.s32.f32 %v748_v43 }
 0x131   :  { %v2963_v34 = vpop.xlane.xlu1 %692  ;;  %v2966_v33 = vpop.xlane.xlu0 %707 }
 0x132   :  { %3972 = vst [vmem:[#allocation17_spill] sm:$0xff] %v2963_v34  ;;  %3973 = vst [vmem:[#allocation19_spill] sm:$0xff] %v2966_v33  ;;  %vm694_vm11 = vcmp.eq.f32.partialorder %v2582_v5, %v2963_v34  ;;  %vm709_vm12 = vcmp.eq.f32.partialorder %v3974_v56, %v2966_v33  ;;  %v763_v5 = vand.u32 65535, %v3976_v22  ;;  %v793_v56 = vand.u32 65535, %v2657_v39  ;;  %v3983_v22 = vld [vmem:[#allocation27_spill] sm:$0xff] }
 0x133   :  { %v695_v46 = vsel %vm694_vm11, %v690_v44, inf  ;;  %v710_v55 = vsel %vm709_vm12, %v705_v26, inf  ;;  %v3979_v44 = vld [vmem:[#allocation24_spill] sm:$0xff] }
 0x134   :  { %696 = vmin.xlane.f32.xlu1 %v695_v46  ;;  %711 = vmin.xlane.f32.xlu0 %v710_v55  ;;  %v778_v46 = vand.u32 65535, %v2645_v11  ;;  %v765_v42 = vcvt.s32.f32 %v763_v5  ;;  %v808_v11 = vand.u32 65535, %v2668_v47  ;;  %v795_v39 = vcvt.s32.f32 %v793_v56 }
 0x135   :  { %v2974_v25 = vpop.xlane.xlu1 %722  ;;  %v2977_v57 = vpop.xlane.xlu0 %737 }
 0x136   :  { %3975 = vst [vmem:[#allocation18_spill] sm:$0xff] %v2974_v25  ;;  %3977 = vst [vmem:[#allocation21_spill] sm:$0xff] %v2977_v57  ;;  %vm724_vm13 = vcmp.eq.f32.partialorder %v3978_v30, %v2974_v25  ;;  %vm739_vm14 = vcmp.eq.f32.partialorder %v3979_v44, %v2977_v57  ;;  %v780_v43 = vcvt.s32.f32 %v778_v46 }
 0x137   :  { %v725_v6 = vsel %vm724_vm13, %v720_v61, inf  ;;  %v740_v26 = vsel %vm739_vm14, %v735_v23, inf }
 0x138   :  { %726 = vmin.xlane.f32.xlu1 %v725_v6  ;;  %741 = vmin.xlane.f32.xlu0 %v740_v26 }
 0x139   :  { %v2984_v58 = vpop.xlane.xlu1 %752  ;;  %v2987_v55 = vpop.xlane.xlu0 %767 }
 0x13a   :  { %3980 = vst [vmem:[#allocation20_spill] sm:$0xff] %v2984_v58  ;;  %3981 = vst [vmem:[#allocation22_spill] sm:$0xff] %v2987_v55  ;;  %vm754_vm15 = vcmp.eq.f32.partialorder %v3982_v8, %v2984_v58  ;;  %vm769_vm1 = vcmp.eq.f32.partialorder %v3983_v22, %v2987_v55  ;;  %v3987_v22 = vlaneseq  ;;  %v3988_v55 = vmov 0.0  }
 0x13b   :  { %v755_v61 = vsel %vm754_vm15, %v750_v10, inf  ;;  %v770_v30 = vsel %vm769_vm1, %v765_v42, inf }
 0x13c   :  { %756 = vmin.xlane.f32.xlu1 %v755_v61  ;;  %771 = vmin.xlane.f32.xlu0 %v770_v30  ;;  %v810_v61 = vcvt.s32.f32 %v808_v11  ;;  %v3012_v30 = vshrl.u32 %v3987_v22, 7  ;;  %v3025_v22 = vstv %s3875_s0 }
 0x13d   :  { %v2994_v23 = vpop.xlane.xlu1 %782  ;;  %v2996_v6 = vpop.xlane.xlu0 %797 }
 0x13e   :  { %3984 = vst [vmem:[#allocation25_spill] sm:$0xff] %v2994_v23  ;;  %3985 = vst [vmem:[#allocation23_spill] sm:$0xff] %v2996_v6  ;;  %vm784_vm2 = vcmp.eq.f32.partialorder %v2665_v13, %v2994_v23  ;;  %vm799_vm3 = vcmp.eq.f32.partialorder %v2670_v35, %v2996_v6  ;;  %v1133_v13 = vadd.s32 8, %v3012_v30  ;;  %v1134_v11 = vadd.s32 16, %v3012_v30 }
 0x13f   :  { %v785_v26 = vsel %vm784_vm2, %v780_v43, inf  ;;  %v800_v8 = vsel %vm799_vm3, %v795_v39, inf  ;;  %v1294_v39 = vcvt.s32.f32 %v2430_v4  ;;  %v1135_v43 = vadd.s32 24, %v3012_v30 }
 0x140   :  { %786 = vmin.xlane.f32.xlu1 %v785_v26  ;;  %801 = vmin.xlane.f32.xlu0 %v800_v8  ;;  %vm1198_vm4 = vcmp.lt.s32.totalorder %v3012_v30, %v3025_v22  ;;  %vm1199_vm5 = vcmp.lt.s32.totalorder %v1133_v13, %v3025_v22  ;;  %vm1200_vm6 = vcmp.lt.s32.totalorder %v1134_v11, %v3025_v22  ;;  %v3903_v4 = vmov 0.0  }
 0x141   :  { %v3009_v56 = vpop.xlane.xlu1 %812  ;;  %v328_v10 = vpop.xlane.xlu0 %327  ;;  %v3034_v46 = vmul.f32 0.06666667, %v1294_v39  ;;  %v1329_v47 = vadd.f32 1.0, %v1294_v39  ;;  %vm1201_vm7 = vcmp.lt.s32.totalorder %v1135_v43, %v3025_v22  ;;  %v1140_v39 = vadd.s32 64, %v3012_v30 }
 0x142   :  { %3986 = vst [vmem:[#allocation24_spill] sm:$0xff] %v3009_v56  ;;  %vm814_vm0 = vcmp.eq.f32.partialorder %v2678_v19, %v3009_v56  ;;  %2042 = vrcp.f32 %v328_v10  ;;  %v1136_v19 = vadd.s32 32, %v3012_v30  ;;  %v1138_v10 = vadd.s32 48, %v3012_v30 }
 0x143   :  { %v815_v8 = vsel %vm814_vm0, %v810_v61, inf  ;;  %v1902_v44 = vsel %vm1198_vm4, 1.0, %v3903_v4  ;;  %v3048_v5 = vmul.f32 0.06666667, %v1329_v47  ;;  %v1141_v56 = vadd.s32 72, %v3012_v30 }
 0x144   :  { %816 = vmin.xlane.f32.xlu1 %v815_v8  ;;  %v1137_v8 = vadd.s32 40, %v3012_v30  ;;  %vm1202_vm8 = vcmp.lt.s32.totalorder %v1136_v19, %v3025_v22  ;;  %v1903_v23 = vsel %vm1199_vm5, 1.0, %v3903_v4  ;;  %v3057_v6 = vsel %vm1200_vm6, 1.0, %v3903_v4 }
 0x145   :  { %v331_v61 = vpop.xlane.xlu1 %330  ;;  %v334_v42 = vpop.xlane.xlu0 %333  ;;  %v3063_v58 = vsel %vm1201_vm7, 1.0, %v3903_v4  ;;  %v3068_v47 = vsel %vm1202_vm8, 1.0, %v3903_v4  ;;  %vm1204_vm10 = vcmp.lt.s32.totalorder %v1138_v10, %v3025_v22  ;;  %vm1206_vm13 = vcmp.lt.s32.totalorder %v1140_v39, %v3025_v22 }
 0x146   :  { %2044 = vrcp.f32 %v331_v61  ;;  %vm1203_vm9 = vcmp.lt.s32.totalorder %v1137_v8, %v3025_v22  ;;  %v1142_v61 = vadd.s32 80, %v3012_v30  ;;  %v1143_v43 = vadd.s32 88, %v3012_v30 }
 0x147   :  { %2046 = vrcp.f32 %v334_v42  ;;  %v1139_v42 = vadd.s32 56, %v3012_v30  ;;  %v3073_v13 = vsel %vm1203_vm9, 1.0, %v3903_v4  ;;  %v1146_v19 = vadd.s32 112, %v3012_v30 }
 0x148   :  { %vm1208_vm11 = vcmp.lt.s32.totalorder %v1142_v61, %v3025_v22  ;;  %vm1207_vm14 = vcmp.lt.s32.totalorder %v1141_v56, %v3025_v22  ;;  %v1145_v8 = vadd.s32 104, %v3012_v30  ;;  %v1148_v4 = vadd.s32 128, %v3012_v30 }
 0x149   :  { %v337_v35 = vpop.xlane.xlu1 %336  ;;  %v340_v26 = vpop.xlane.xlu0 %339  ;;  %vm1205_vm12 = vcmp.lt.s32.totalorder %v1139_v42, %v3025_v22  ;;  %v1147_v61 = vadd.s32 120, %v3012_v30  ;;  %v3089_v39 = vsel %vm1204_vm10, 1.0, %v3988_v55  ;;  %v3103_v57 = vsel %vm1207_vm14, 1.0, %v3988_v55 }
 0x14a   :  { %2048 = vrcp.f32 %v337_v35  ;;  %v1144_v35 = vadd.s32 96, %v3012_v30  ;;  %v3095_v56 = vsel %vm1205_vm12, 1.0, %v3988_v55  ;;  %vm1209_vm3 = vcmp.lt.s32.totalorder %v1143_v43, %v3025_v22 }
 0x14b   :  { %2050 = vrcp.f32 %v340_v26  ;;  %vm1212_vm4 = vcmp.lt.s32.totalorder %v1146_v19, %v3025_v22  ;;  %vm1211_vm5 = vcmp.lt.s32.totalorder %v1145_v8, %v3025_v22  ;;  %vm1214_vm6 = vcmp.lt.s32.totalorder %v1148_v4, %v3025_v22 }
 0x14c   :  { %vm1210_vm15 = vcmp.lt.s32.totalorder %v1144_v35, %v3025_v22  ;;  %vm1213_vm7 = vcmp.lt.s32.totalorder %v1147_v61, %v3025_v22  ;;  %v3123_v54 = vsel %vm1209_vm3, 1.0, %v3988_v55  ;;  %v3141_v14 = vsel %vm1214_vm6, 1.0, %v3988_v55 }
 0x14d   :  { %v343_v26 = vpop.xlane.xlu1 %342  ;;  %v346_v11 = vpop.xlane.xlu0 %345  ;;  %v3109_v34 = vsel %vm1210_vm15, 1.0, %v3988_v55  ;;  %v3146_v19 = vsel %vm1213_vm7, 1.0, %v3988_v55 }
 0x14e   :  { %2052 = vrcp.f32 %v343_v26  ;;  %v3092_v26 = vsel %vm1208_vm11, 1.0, %v3988_v55 }
 0x14f   :  { %2054 = vrcp.f32 %v346_v11  ;;  %v2043_v42 = vpop.eup %2042  ;;  %v3098_v11 = vsel %vm1206_vm13, 1.0, %v3988_v55 }
 0x150   :  { %vm1297_vm1 = vcmp.gt.f32.partialorder %v2043_v42, %v3034_v46  ;;  %vm1331_vm2 = vcmp.le.f32.partialorder %v2043_v42, %v3048_v5 }
 0x151   :  { %v349_v25 = vpop.xlane.xlu1 %348  ;;  %v352_v10 = vpop.xlane.xlu0 %351  ;;  %vm1363_vm0 = vmand %vm1297_vm1, %vm1331_vm2 }
 0x152   :  { %2056 = vrcp.f32 %v349_v25  ;;  %v1934_v33 = vsel %vm1363_vm0, 1.0, %v3988_v55 }
 0x153   :  { %v2045_v63 = vpop.eup %2044  ;;  %2058 = vrcp.f32 %v352_v10  ;;  %v3118_v35 = vmul.f32 %v1934_v33, %v1902_v44  ;;  %v3130_v10 = vsel %vm1212_vm4, 1.0, %v3988_v55  ;;  %v3135_v33 = vsel %vm1211_vm5, 1.0, %v3988_v55 }
 0x154   :  { %v2047_v25 = vpop.eup %2046  ;;  %vm1298_vm8 = vcmp.gt.f32.partialorder %v2045_v63, %v3034_v46  ;;  %vm1332_vm9 = vcmp.le.f32.partialorder %v2045_v63, %v3048_v5 }
 0x155   :  { %3989 = vst [vmem:[#allocation26_spill] sm:$0xff] %v3118_v35  ;;  %v355_v18 = vpop.xlane.xlu1 %354  ;;  %vm1299_vm10 = vcmp.gt.f32.partialorder %v2047_v25, %v3034_v46  ;;  %vm1333_vm11 = vcmp.le.f32.partialorder %v2047_v25, %v3048_v5  ;;  %vm1364_vm12 = vmand %vm1298_vm8, %vm1332_vm9  ;;  %v358_v44 = vpop.xlane.xlu0 %357  ;;  %v1526_v4 = vmul.f32 %v2043_v42, %v3118_v35 }
 0x156   :  { %2060 = vrcp.f32 %v355_v18  ;;  %vm1365_vm13 = vmand %vm1299_vm10, %vm1333_vm11  ;;  %v1935_v43 = vsel %vm1364_vm12, 1.0, %v3988_v55  ;;  %v3152_v18 = vadd.s32 136, %v3012_v30 }
 0x157   :  { %v2049_v38 = vpop.eup %2048  ;;  %2062 = vrcp.f32 %v358_v44  ;;  %v1936_v8 = vsel %vm1365_vm13, 1.0, %v3988_v55  ;;  %v3149_v16 = vmul.f32 %v1935_v43, %v1903_v23 }
 0x158   :  { %v2051_v41 = vpop.eup %2050  ;;  %v3155_v62 = vmul.f32 %v1936_v8, %v3057_v6  ;;  %vm1300_vm14 = vcmp.gt.f32.partialorder %v2049_v38, %v3034_v46  ;;  %vm1334_vm15 = vcmp.le.f32.partialorder %v2049_v38, %v3048_v5  ;;  %v3168_v8 = vadd.s32 144, %v3012_v30 }
 0x159   :  { %3990 = vst [vmem:[#allocation27_spill] sm:$0xff] %v3149_v16  ;;  %v361_v61 = vpop.xlane.xlu1 %360  ;;  %v1492_v44 = vadd.f32 %v3149_v16, %v3118_v35  ;;  %v1527_v23 = vmul.f32 %v2045_v63, %v3149_v16  ;;  %vm1366_vm1 = vmand %vm1300_vm14, %vm1334_vm15  ;;  %vm1301_vm2 = vcmp.gt.f32.partialorder %v2051_v41, %v3034_v46  ;;  %vm1335_vm3 = vcmp.le.f32.partialorder %v2051_v41, %v3048_v5  ;;  %v364_v6 = vpop.xlane.xlu0 %363 }
 0x15a   :  { %3991 = vst [vmem:[#allocation33_spill] sm:$0xff] %v3155_v62  ;;  %2064 = vrcp.f32 %v361_v61  ;;  %v1528_v43 = vmul.f32 %v2047_v25, %v3155_v62  ;;  %v1937_v42 = vsel %vm1366_vm1, 1.0, %v3988_v55  ;;  %vm1367_vm0 = vmand %vm1301_vm2, %vm1335_vm3  ;;  %vm1215_vm6 = vcmp.lt.s32.totalorder %v3152_v18, %v3025_v22 }
 0x15b   :  { %v2053_v60 = vpop.eup %2052  ;;  %2066 = vrcp.f32 %v364_v6  ;;  %v1493_v35 = vadd.f32 %v1492_v44, %v3155_v62  ;;  %v1558_v63 = vadd.f32 %v1527_v23, %v1526_v4  ;;  %v3172_v16 = vmul.f32 %v1937_v42, %v3063_v58 }
 0x15c   :  { %v2055_v27 = vpop.eup %2054  ;;  %v1938_v61 = vsel %vm1367_vm0, 1.0, %v3988_v55  ;;  %vm1302_vm4 = vcmp.gt.f32.partialorder %v2053_v60, %v3034_v46  ;;  %vm1336_vm5 = vcmp.le.f32.partialorder %v2053_v60, %v3048_v5 }
 0x15d   :  { %v367_v25 = vpop.xlane.xlu1 %366  ;;  %v1559_v48 = vadd.f32 %v1558_v63, %v1528_v43  ;;  %v1494_v6 = vadd.f32 %v1493_v35, %v3172_v16  ;;  %v1529_v44 = vmul.f32 %v2049_v38, %v3172_v16  ;;  %v3182_v4 = vmul.f32 %v1938_v61, %v3068_v47  ;;  %vm1368_vm7 = vmand %vm1302_vm4, %vm1336_vm5  ;;  %v370_v58 = vpop.xlane.xlu0 %369 }
 0x15e   :  { %2068 = vrcp.f32 %v367_v25  ;;  %v1939_v23 = vsel %vm1368_vm7, 1.0, %v3988_v55  ;;  %vm1303_vm8 = vcmp.gt.f32.partialorder %v2055_v27, %v3034_v46  ;;  %vm1337_vm9 = vcmp.le.f32.partialorder %v2055_v27, %v3048_v5 }
 0x15f   :  { %v2057_v42 = vpop.eup %2056  ;;  %2070 = vrcp.f32 %v370_v58  ;;  %v1560_v62 = vadd.f32 %v1559_v48, %v1529_v44  ;;  %v1495_v43 = vadd.f32 %v1494_v6, %v3182_v4  ;;  %v1530_v35 = vmul.f32 %v2051_v41, %v3182_v4  ;;  %vm1369_vm10 = vmand %vm1303_vm8, %vm1337_vm9 }
 0x160   :  { %v2059_v38 = vpop.eup %2058  ;;  %v3190_v47 = vmul.f32 %v1939_v23, %v3073_v13  ;;  %v1940_v63 = vsel %vm1369_vm10, 1.0, %v3988_v55  ;;  %vm1304_vm11 = vcmp.gt.f32.partialorder %v2057_v42, %v3034_v46  ;;  %vm1338_vm12 = vcmp.le.f32.partialorder %v2057_v42, %v3048_v5 }
 0x161   :  { %v373_v61 = vpop.xlane.xlu1 %372  ;;  %v1561_v25 = vadd.f32 %v1560_v62, %v1530_v35  ;;  %v3196_v58 = vmul.f32 %v1940_v63, %v3089_v39  ;;  %vm1370_vm13 = vmand %vm1304_vm11, %vm1338_vm12  ;;  %vm1305_vm14 = vcmp.gt.f32.partialorder %v2059_v38, %v3034_v46  ;;  %vm1339_vm15 = vcmp.le.f32.partialorder %v2059_v38, %v3048_v5  ;;  %v376_v48 = vpop.xlane.xlu0 %375 }
 0x162   :  { %2072 = vrcp.f32 %v373_v61  ;;  %v1496_v41 = vadd.f32 %v1495_v43, %v3190_v47  ;;  %v1531_v13 = vmul.f32 %v2053_v60, %v3190_v47  ;;  %v1941_v6 = vsel %vm1370_vm13, 1.0, %v3988_v55  ;;  %vm1371_vm1 = vmand %vm1305_vm14, %vm1339_vm15 }
 0x163   :  { %v2061_v44 = vpop.eup %2060  ;;  %2074 = vrcp.f32 %v376_v48  ;;  %v1532_v62 = vmul.f32 %v2055_v27, %v3196_v58  ;;  %v3205_v39 = vmul.f32 %v1941_v6, %v3095_v56  ;;  %v1942_v23 = vsel %vm1371_vm1, 1.0, %v3988_v55 }
 0x164   :  { %v2063_v35 = vpop.eup %2062  ;;  %v1562_v63 = vadd.f32 %v1561_v25, %v1531_v13  ;;  %v1497_v61 = vadd.f32 %v1496_v41, %v3196_v58  ;;  %v3210_v43 = vmul.f32 %v1942_v23, %v3098_v11  ;;  %vm1306_vm2 = vcmp.gt.f32.partialorder %v2061_v44, %v3034_v46 }
 0x165   :  { %3992 = vst [vmem:[#allocation34_spill] sm:$0xff] %v3205_v39  ;;  %v379_v60 = vpop.xlane.xlu1 %378  ;;  %vm1307_vm3 = vcmp.gt.f32.partialorder %v2063_v35, %v3034_v46  ;;  %vm1341_vm0 = vcmp.le.f32.partialorder %v2063_v35, %v3048_v5  ;;  %v1533_v27 = vmul.f32 %v2057_v42, %v3205_v39  ;;  %vm1340_vm4 = vcmp.le.f32.partialorder %v2061_v44, %v3048_v5  ;;  %v382_v56 = vpop.xlane.xlu0 %381 }
 0x166   :  { %3993 = vst [vmem:[#allocation35_spill] sm:$0xff] %v3210_v43  ;;  %2076 = vrcp.f32 %v379_v60  ;;  %v1563_v48 = vadd.f32 %v1562_v63, %v1532_v62  ;;  %vm1373_vm5 = vmand %vm1307_vm3, %vm1341_vm0  ;;  %v1498_v25 = vadd.f32 %v1497_v61, %v3205_v39  ;;  %v3222_v11 = vsel %vm1215_vm6, 1.0, %v3988_v55 }
 0x167   :  { %v2065_v41 = vpop.eup %2064  ;;  %2078 = vrcp.f32 %v382_v56  ;;  %v1944_v13 = vsel %vm1373_vm5, 1.0, %v3988_v55  ;;  %v1534_v42 = vmul.f32 %v2059_v38, %v3210_v43  ;;  %vm1372_vm7 = vmand %vm1306_vm2, %vm1340_vm4  ;;  %vm1216_vm8 = vcmp.lt.s32.totalorder %v3168_v8, %v3025_v22 }
 0x168   :  { %v3231_v6 = vadd.s32 152, %v3012_v30  ;;  %v2067_v62 = vpop.eup %2066  ;;  %v3234_v18 = vmul.f32 %v1944_v13, %v3092_v26  ;;  %v1564_v23 = vadd.f32 %v1563_v48, %v1533_v27  ;;  %v1499_v63 = vadd.f32 %v1498_v25, %v3210_v43 }
 0x169   :  { %v1943_v61 = vsel %vm1372_vm7, 1.0, %v3988_v55  ;;  %v385_v60 = vpop.xlane.xlu1 %384  ;;  %vm1309_vm6 = vcmp.gt.f32.partialorder %v2067_v62, %v3034_v46  ;;  %vm1343_vm9 = vcmp.le.f32.partialorder %v2067_v62, %v3048_v5  ;;  %vm1308_vm10 = vcmp.gt.f32.partialorder %v2065_v41, %v3034_v46  ;;  %v388_v56 = vpop.xlane.xlu0 %387 }
 0x16a   :  { %v3241_v38 = vmul.f32 %v1943_v61, %v3103_v57  ;;  %2080 = vrcp.f32 %v385_v60  ;;  %v1536_v26 = vmul.f32 %v2063_v35, %v3234_v18  ;;  %vm1375_vm11 = vmand %vm1309_vm6, %vm1343_vm9  ;;  %v1565_v27 = vadd.f32 %v1564_v23, %v1534_v42 }
 0x16b   :  { %vm1342_vm12 = vcmp.le.f32.partialorder %v2065_v41, %v3048_v5  ;;  %v2069_v48 = vpop.eup %2068  ;;  %2082 = vrcp.f32 %v388_v56  ;;  %v1946_v25 = vsel %vm1375_vm11, 1.0, %v3988_v55 }
 0x16c   :  { %3994 = vst [vmem:[#allocation36_spill] sm:$0xff] %v3241_v38  ;;  %v1500_v13 = vadd.f32 %v1499_v63, %v3241_v38  ;;  %v1535_v43 = vmul.f32 %v2061_v44, %v3241_v38  ;;  %vm1374_vm13 = vmand %vm1308_vm10, %vm1342_vm12  ;;  %v2071_v57 = vpop.eup %2070  ;;  %v3250_v61 = vmul.f32 %v1946_v25, %v3109_v34  ;;  %vm1310_vm14 = vcmp.gt.f32.partialorder %v2069_v48, %v3034_v46 }
 0x16d   :  { %v1945_v60 = vsel %vm1374_vm13, 1.0, %v3988_v55  ;;  %vm1344_vm15 = vcmp.le.f32.partialorder %v2069_v48, %v3048_v5  ;;  %v391_v35 = vpop.xlane.xlu1 %390  ;;  %vm1311_vm1 = vcmp.gt.f32.partialorder %v2071_v57, %v3034_v46  ;;  %vm1345_vm2 = vcmp.le.f32.partialorder %v2071_v57, %v3048_v5  ;;  %v394_v44 = vpop.xlane.xlu0 %393 }
 0x16e   :  { %3995 = vst [vmem:[#allocation37_spill] sm:$0xff] %v3250_v61  ;;  %v1566_v42 = vadd.f32 %v1565_v27, %v1535_v43  ;;  %v3258_v23 = vmul.f32 %v1945_v60, %v3123_v54  ;;  %vm1376_vm3 = vmand %vm1310_vm14, %vm1344_vm15  ;;  %2084 = vrcp.f32 %v391_v35  ;;  %v1538_v34 = vmul.f32 %v2067_v62, %v3250_v61 }
 0x16f   :  { %vm1377_vm0 = vmand %vm1311_vm1, %vm1345_vm2  ;;  %v1501_v63 = vadd.f32 %v1500_v13, %v3234_v18  ;;  %v1947_v56 = vsel %vm1376_vm3, 1.0, %v3988_v55  ;;  %v2073_v25 = vpop.eup %2072  ;;  %2086 = vrcp.f32 %v394_v44  ;;  %vm1217_vm10 = vcmp.lt.s32.totalorder %v3231_v6, %v3025_v22 }
 0x170   :  { %v1948_v38 = vsel %vm1377_vm0, 1.0, %v3988_v55  ;;  %v1537_v39 = vmul.f32 %v2065_v41, %v3258_v23  ;;  %v1567_v43 = vadd.f32 %v1566_v42, %v1536_v26  ;;  %v2075_v27 = vpop.eup %2074  ;;  %v3270_v62 = vmul.f32 %v1947_v56, %v3135_v33 }
 0x171   :  { %v3266_v54 = vmul.f32 %v1948_v38, %v3130_v10  ;;  %v1502_v60 = vadd.f32 %v1501_v63, %v3258_v23  ;;  %vm1312_vm4 = vcmp.gt.f32.partialorder %v2073_v25, %v3034_v46  ;;  %v397_v13 = vpop.xlane.xlu1 %396  ;;  %vm1313_vm5 = vcmp.gt.f32.partialorder %v2075_v27, %v3034_v46  ;;  %v400_v41 = vpop.xlane.xlu0 %399 }
 0x172   :  { %3997 = vst [vmem:[#allocation39_spill] sm:$0xff] %v3270_v62  ;;  %vm1347_vm7 = vcmp.le.f32.partialorder %v2075_v27, %v3048_v5  ;;  %v1568_v35 = vadd.f32 %v1567_v43, %v1537_v39  ;;  %vm1346_vm6 = vcmp.le.f32.partialorder %v2073_v25, %v3048_v5  ;;  %v1539_v38 = vmul.f32 %v2069_v48, %v3270_v62 }
 0x173   :  { %3996 = vst [vmem:[#allocation38_spill] sm:$0xff] %v3266_v54  ;;  %vm1379_vm9 = vmand %vm1313_vm5, %vm1347_vm7  ;;  %v1503_v10 = vadd.f32 %v1502_v60, %v3250_v61  ;;  %v1920_v33 = vsel %vm1216_vm8, 1.0, %v3988_v55  ;;  %v2077_v26 = vpop.eup %2076  ;;  %2088 = vrcp.f32 %v397_v13  ;;  %v1540_v39 = vmul.f32 %v2071_v57, %v3266_v54 }
 0x174   :  { %v1950_v42 = vsel %vm1379_vm9, 1.0, %v3988_v55  ;;  %v1569_v44 = vadd.f32 %v1568_v35, %v1538_v34  ;;  %vm1378_vm11 = vmand %vm1312_vm4, %vm1346_vm6  ;;  %v2079_v63 = vpop.eup %2078  ;;  %vm1314_vm8 = vcmp.gt.f32.partialorder %v2077_v26, %v3034_v46  ;;  %vm1348_vm12 = vcmp.le.f32.partialorder %v2077_v26, %v3048_v5 }
 0x175   :  { %v3289_v48 = vmul.f32 %v1950_v42, %v3141_v14  ;;  %v1504_v8 = vadd.f32 %v1503_v10, %v3270_v62  ;;  %v1949_v56 = vsel %vm1378_vm11, 1.0, %v3988_v55  ;;  %v403_v43 = vpop.xlane.xlu1 %402  ;;  %vm1315_vm13 = vcmp.gt.f32.partialorder %v2079_v63, %v3034_v46  ;;  %v3299_v34 = vpop.xlane.xlu0 %405  ;;  %vm1380_vm14 = vmand %vm1314_vm8, %vm1348_vm12 }
 0x176   :  { %v1570_v60 = vadd.f32 %v1569_v44, %v1539_v38  ;;  %v3295_v57 = vmul.f32 %v1949_v56, %v3146_v19  ;;  %vm1349_vm15 = vcmp.le.f32.partialorder %v2079_v63, %v3048_v5  ;;  %v1921_v13 = vsel %vm1217_vm10, 1.0, %v3988_v55 }
 0x177   :  { %3998 = vst [vmem:[#allocation40_spill] sm:$0xff] %v3289_v48  ;;  %v1505_v14 = vadd.f32 %v1504_v8, %v3266_v54  ;;  %v1152_v35 = vadd.s32 160, %v3012_v30  ;;  %v2081_v19 = vpop.eup %2080  ;;  %v1951_v42 = vsel %vm1380_vm14, 1.0, %v3988_v55  ;;  %vm1381_vm1 = vmand %vm1315_vm13, %vm1349_vm15  ;;  %v1153_v44 = vadd.s32 168, %v3012_v30 }
 0x178   :  { %3999 = vst [vmem:[#allocation41_spill] sm:$0xff] %v3295_v57  ;;  %v1541_v10 = vmul.f32 %v2073_v25, %v3295_v57  ;;  %v1571_v38 = vadd.f32 %v1570_v60, %v1540_v39  ;;  %v3311_v8 = vpop.eup %2082  ;;  %v3315_v54 = vmul.f32 %v1951_v42, %v3222_v11  ;;  %v1952_v6 = vsel %vm1381_vm1, 1.0, %v3988_v55 }
 0x179   :  { %v1506_v56 = vadd.f32 %v1505_v14, %v3295_v57  ;;  %vm1316_vm2 = vcmp.gt.f32.partialorder %v2081_v19, %v3034_v46  ;;  %2090 = vrcp.f32 %v400_v41  ;;  %v409_v62 = vpop.xlane.xlu1 %408  ;;  %v1542_v25 = vmul.f32 %v2075_v27, %v3289_v48  ;;  %v3321_v60 = vpop.xlane.xlu0 %411 }
 0x17a   :  { %v1572_v39 = vadd.f32 %v1571_v38, %v1541_v10  ;;  %vm1350_vm3 = vcmp.le.f32.partialorder %v2081_v19, %v3048_v5  ;;  %v1543_v14 = vmul.f32 %v2077_v26, %v3315_v54  ;;  %vm1317_vm4 = vcmp.gt.f32.partialorder %v3311_v8, %v3034_v46 }
 0x17b   :  { %v1507_v61 = vadd.f32 %v1506_v56, %v3289_v48  ;;  %vm1382_vm0 = vmand %vm1316_vm2, %vm1350_vm3  ;;  %vm1351_vm5 = vcmp.le.f32.partialorder %v3311_v8, %v3048_v5  ;;  %v3329_v11 = vpop.eup %2084  ;;  %v4000_v27 = vand.u32 65535, %v2779_v36  ;;  %v3333_v38 = vmul.f32 %v1952_v6, %v1920_v33 }
 0x17c   :  { %v1573_v10 = vadd.f32 %v1572_v39, %v1542_v25  ;;  %v1953_v42 = vsel %vm1382_vm0, 1.0, %v3988_v55  ;;  %v3336_v56 = vpop.eup %2086  ;;  %2092 = vrcp.f32 %v403_v43  ;;  %vm1218_vm7 = vcmp.lt.s32.totalorder %v1152_v35, %v3025_v22  ;;  %vm1383_vm9 = vmand %vm1317_vm4, %vm1351_vm5 }
 0x17d   :  { %v825_v41 = vcvt.s32.f32 %v4000_v27  ;;  %v1508_v26 = vadd.f32 %v1507_v61, %v3315_v54  ;;  %vm1318_vm6 = vcmp.gt.f32.partialorder %v3329_v11, %v3034_v46  ;;  %v3342_v48 = vpop.xlane.xlu1 %414  ;;  %v3344_v36 = vmul.f32 %v1953_v42, %v1921_v13  ;;  %v3352_v61 = vpop.xlane.xlu0 %827 }
 0x17e   :  { %v1574_v57 = vadd.f32 %v1573_v10, %v1543_v14  ;;  %vm1219_vm10 = vcmp.lt.s32.totalorder %v1153_v44, %v3025_v22  ;;  %vm1352_vm11 = vcmp.le.f32.partialorder %v3329_v11, %v3048_v5  ;;  %v4001_v33 = vand.u32 65535, %v2791_v1 }
 0x17f   :  { %v4002_v6 = vand.u32 65535, %v2794_v28  ;;  %v1509_v13 = vadd.f32 %v1508_v26, %v3333_v38  ;;  %v1154_v39 = vadd.s32 176, %v3012_v30  ;;  %vm829_vm8 = vcmp.eq.f32.partialorder %v2804_v2, %v3352_v61  ;;  %vm1384_vm12 = vmand %vm1318_vm6, %vm1352_vm11 }
 0x180   :  { %v840_v43 = vcvt.s32.f32 %v4001_v33  ;;  %v4003_v44 = vand.u32 65535, %v2808_v29  ;;  %v1544_v27 = vmul.f32 %v2079_v63, %v3333_v38  ;;  %v1922_v1 = vsel %vm1218_vm7, 1.0, %v3988_v55  ;;  %v3371_v28 = vpop.eup %2088 }
 0x181   :  { %v855_v25 = vcvt.s32.f32 %v4002_v6  ;;  %v830_v10 = vsel %vm829_vm8, %v825_v41, inf  ;;  %v1954_v42 = vsel %vm1383_vm9, 1.0, %v3988_v55  ;;  %v1923_v2 = vsel %vm1219_vm10, 1.0, %v3988_v55  ;;  %v3376_v26 = vpop.xlane.xlu1 %842  ;;  %v3385_v41 = vpop.xlane.xlu0 %857 }
 0x182   :  { %v870_v14 = vcvt.s32.f32 %v4003_v44  ;;  %v1155_v29 = vadd.s32 184, %v3012_v30  ;;  %831 = vmin.xlane.f32.xlu0 %v830_v10  ;;  %v1575_v63 = vadd.f32 %v1574_v57, %v1544_v27  ;;  %v1545_v35 = vmul.f32 %v2081_v19, %v3344_v36 }
 0x183   :  { %vm1319_vm13 = vcmp.gt.f32.partialorder %v3336_v56, %v3034_v46  ;;  %vm1353_vm14 = vcmp.le.f32.partialorder %v3336_v56, %v3048_v5  ;;  %vm844_vm15 = vcmp.eq.f32.partialorder %v2820_v24, %v3376_v26  ;;  %v1510_v33 = vadd.f32 %v1509_v13, %v3344_v36 }
 0x184   :  { %v1955_v6 = vsel %vm1384_vm12, 1.0, %v3988_v55  ;;  %vm1220_vm1 = vcmp.lt.s32.totalorder %v1154_v39, %v3025_v22  ;;  %2094 = vrcp.f32 %v3299_v34  ;;  %vm859_vm2 = vcmp.eq.f32.partialorder %v2824_v3, %v3385_v41  ;;  %vm3400_vm3 = vmand %vm1319_vm13, %vm1353_vm14 }
 0x185   :  { %v845_v57 = vsel %vm844_vm15, %v840_v43, inf  ;;  %v3393_v19 = vmul.f32 %v1954_v42, %v1922_v1  ;;  %2096 = vrcp.f32 %v409_v62  ;;  %v860_v44 = vsel %vm859_vm2, %v855_v25, inf  ;;  %v3405_v3 = vpop.xlane.xlu1 %872  ;;  %v3417_v62 = vpop.xlane.xlu0 %887 }
 0x186   :  { %846 = vmin.xlane.f32.xlu1 %v845_v57  ;;  %v4004_v24 = vand.u32 65535, %v2811_v45  ;;  %vm1221_vm0 = vcmp.lt.s32.totalorder %v1155_v29, %v3025_v22  ;;  %861 = vmin.xlane.f32.xlu0 %v860_v44  ;;  %v1576_v34 = vadd.f32 %v1575_v63, %v1545_v35  ;;  %v3407_v43 = vmul.f32 %v1955_v6, %v1923_v2  ;;  %v3413_v45 = vpop.eup %2090 }
 0x187   :  { %vm1320_vm4 = vcmp.gt.f32.partialorder %v3371_v28, %v3034_v46  ;;  %vm1354_vm5 = vcmp.le.f32.partialorder %v3371_v28, %v3048_v5  ;;  %vm874_vm7 = vcmp.eq.f32.partialorder %v2842_v0, %v3405_v3  ;;  %v4007_v25 = vand.u32 65535, %v2828_v49 }
 0x188   :  { %v885_v27 = vcvt.s32.f32 %v4004_v24  ;;  %v1511_v10 = vadd.f32 %v1510_v33, %v3393_v19  ;;  %v1924_v42 = vsel %vm1220_vm1, 1.0, %v3988_v55  ;;  %vm889_vm6 = vcmp.eq.f32.partialorder %v2845_v59, %v3417_v62  ;;  %vm3443_vm9 = vmand %vm1320_vm4, %vm1354_vm5 }
 0x189   :  { %v900_v1 = vcvt.s32.f32 %v4007_v25  ;;  %v875_v2 = vsel %vm874_vm7, %v870_v14, inf  ;;  %v1546_v63 = vmul.f32 %v3311_v8, %v3393_v19  ;;  %v1956_v0 = vsel %vm3400_vm3, 1.0, %v3988_v55  ;;  %v3448_v14 = vpop.eup %2092  ;;  %v3458_v44 = vpop.xlane.xlu0 %917 }
 0x18a   :  { %876 = vmin.xlane.f32.xlu1 %v875_v2  ;;  %v890_v49 = vsel %vm889_vm6, %v885_v27, inf  ;;  %v4008_v35 = vand.u32 65535, %v2832_v17  ;;  %v1925_v39 = vsel %vm1221_vm0, 1.0, %v3988_v55  ;;  %v1156_v8 = vadd.s32 192, %v3012_v30  ;;  %v3451_v17 = vpop.xlane.xlu1 %902 }
 0x18b   :  { %2098 = vrcp.f32 %v3321_v60  ;;  %891 = vmin.xlane.f32.xlu0 %v890_v49  ;;  %v1577_v29 = vadd.f32 %v1576_v34, %v1546_v63  ;;  %v1547_v6 = vmul.f32 %v3329_v11, %v3407_v43  ;;  %v1157_v57 = vadd.s32 200, %v3012_v30 }
 0x18c   :  { %v915_v33 = vcvt.s32.f32 %v4008_v35  ;;  %vm904_vm10 = vcmp.eq.f32.partialorder %v2862_v37, %v3451_v17  ;;  %v1512_v24 = vadd.f32 %v1511_v10, %v3407_v43  ;;  %v3461_v27 = vmul.f32 %v1956_v0, %v1924_v42 }
 0x18d   :  { %vm1321_vm11 = vcmp.gt.f32.partialorder %v3413_v45, %v3034_v46  ;;  %vm919_vm8 = vcmp.eq.f32.partialorder %v2865_v7, %v3458_v44  ;;  %v905_v60 = vsel %vm904_vm10, %v900_v1, inf  ;;  %v1957_v11 = vsel %vm3443_vm9, 1.0, %v3988_v55 }
 0x18e   :  { %vm1355_vm12 = vcmp.le.f32.partialorder %v3413_v45, %v3048_v5  ;;  %906 = vmin.xlane.f32.xlu1 %v905_v60  ;;  %v920_v37 = vsel %vm919_vm8, %v915_v33, inf  ;;  %v4011_v13 = vand.u32 65535, %v2849_v53  ;;  %vm1322_vm13 = vcmp.gt.f32.partialorder %v3448_v14, %v3034_v46  ;;  %v3479_v7 = vpop.xlane.xlu1 %932  ;;  %v3486_v53 = vpop.xlane.xlu0 %947 }
 0x18f   :  { %vm1356_vm14 = vcmp.le.f32.partialorder %v3448_v14, %v3048_v5  ;;  %2100 = vrcp.f32 %v3342_v48  ;;  %921 = vmin.xlane.f32.xlu0 %v920_v37  ;;  %v4012_v25 = vand.u32 65535, %v2854_v21  ;;  %v1578_v10 = vadd.f32 %v1577_v29, %v1547_v6  ;;  %vm3497_vm2 = vmand %vm1321_vm11, %vm1355_vm12 }
 0x190   :  { %v930_v34 = vcvt.s32.f32 %v4011_v13  ;;  %vm1222_vm15 = vcmp.lt.s32.totalorder %v1156_v8, %v3025_v22  ;;  %vm934_vm1 = vcmp.eq.f32.partialorder %v2878_v51, %v3479_v7  ;;  %v1513_v42 = vadd.f32 %v1512_v24, %v3461_v27  ;;  %vm3514_vm4 = vmand %vm1322_vm13, %vm1356_vm14 }
 0x191   :  { %v945_v1 = vcvt.s32.f32 %v4012_v25  ;;  %v3489_v2 = vmul.f32 %v1957_v11, %v1925_v39  ;;  %vm1223_vm3 = vcmp.lt.s32.totalorder %v1157_v57, %v3025_v22  ;;  %vm949_vm0 = vcmp.eq.f32.partialorder %v2885_v12, %v3486_v53  ;;  %v3518_v35 = vpop.eup %2094 }
 0x192   :  { %v935_v51 = vsel %vm934_vm1, %v930_v34, inf  ;;  %v4015_v48 = vand.u32 65535, %v2869_v40  ;;  %v1548_v0 = vmul.f32 %v3336_v56, %v3461_v27  ;;  %v4018_v40 = vand.u32 65535, %v2874_v20  ;;  %v3526_v59 = vpop.eup %2096  ;;  %v3528_v29 = vpop.xlane.xlu1 %962 }
 0x193   :  { %936 = vmin.xlane.f32.xlu1 %v935_v51  ;;  %v950_v12 = vsel %vm949_vm0, %v945_v1, inf  ;;  %v1926_v56 = vsel %vm1222_vm15, 1.0, %v3988_v55  ;;  %v1158_v39 = vadd.s32 208, %v3012_v30  ;;  %v1958_v24 = vsel %vm3497_vm2, 1.0, %v3988_v55  ;;  %v3539_v8 = vpop.xlane.xlu0 %977 }
 0x194   :  { %v960_v63 = vcvt.s32.f32 %v4015_v48  ;;  %v975_v33 = vcvt.s32.f32 %v4018_v40  ;;  %951 = vmin.xlane.f32.xlu0 %v950_v12  ;;  %v1579_v6 = vadd.f32 %v1578_v10, %v1548_v0  ;;  %v1927_v20 = vsel %vm1223_vm3, 1.0, %v3988_v55 }
 0x195   :  { %v1159_v60 = vadd.s32 216, %v3012_v30  ;;  %vm964_vm5 = vcmp.eq.f32.partialorder %v2897_v32, %v3528_v29  ;;  %v1514_v11 = vadd.f32 %v1513_v42, %v3489_v2  ;;  %v1549_v37 = vmul.f32 %v3371_v28, %v3489_v2 }
 0x196   :  { %v1959_v13 = vsel %vm3514_vm4, 1.0, %v3988_v55  ;;  %vm979_vm7 = vcmp.eq.f32.partialorder %v2900_v31, %v3539_v8  ;;  %v965_v57 = vsel %vm964_vm5, %v960_v63, inf  ;;  %vm1323_vm6 = vcmp.gt.f32.partialorder %v3518_v35, %v3034_v46  ;;  %v3559_v28 = vpop.xlane.xlu1 %992  ;;  %v4023_v63 = vld [vmem:[#allocation28_spill] sm:$0xff] }
 0x197   :  { %vm1357_vm9 = vcmp.le.f32.partialorder %v3518_v35, %v3048_v5  ;;  %966 = vmin.xlane.f32.xlu1 %v965_v57  ;;  %v980_v32 = vsel %vm979_vm7, %v975_v33, inf  ;;  %v3553_v34 = vmul.f32 %v1958_v24, %v1926_v56  ;;  %vm1324_vm10 = vcmp.gt.f32.partialorder %v3526_v59, %v3034_v46  ;;  %v3570_v21 = vpop.xlane.xlu0 %1007 }
 0x198   :  { %vm1358_vm11 = vcmp.le.f32.partialorder %v3526_v59, %v3048_v5  ;;  %981 = vmin.xlane.f32.xlu0 %v980_v32  ;;  %v4019_v31 = vand.u32 65535, %v2889_v15  ;;  %v4020_v1 = vand.u32 65535, %v2882_v9  ;;  %vm1224_vm8 = vcmp.lt.s32.totalorder %v1158_v39, %v3025_v22  ;;  %v3566_v42 = vpop.eup %2098  ;;  %vm1389_vm13 = vmand %vm1323_vm6, %vm1357_vm9 }
 0x199   :  { %vm994_vm12 = vcmp.eq.f32.partialorder %v2907_v50, %v3559_v28  ;;  %v1580_v51 = vadd.f32 %v1579_v6, %v1549_v37  ;;  %v3572_v48 = vmul.f32 %v1959_v13, %v1927_v20  ;;  %vm1225_vm14 = vcmp.lt.s32.totalorder %v1159_v60, %v3025_v22  ;;  %vm3589_vm1 = vmand %vm1324_vm10, %vm1358_vm11  ;;  %v4025_v60 = vld [vmem:[#allocation29_spill] sm:$0xff] }
 0x19a   :  { %v990_v25 = vcvt.s32.f32 %v4019_v31  ;;  %v1005_v10 = vcvt.s32.f32 %v4020_v1  ;;  %vm1009_vm15 = vcmp.eq.f32.partialorder %v2905_v52, %v3570_v21  ;;  %v4024_v0 = vand.u32 65535, %v4023_v63  ;;  %v3598_v40 = vpop.xlane.xlu1 %1022  ;;  %v4027_v63 = vld [vmem:[#allocation30_spill] sm:$0xff] }
 0x19b   :  { %v1515_v12 = vadd.f32 %v1514_v11, %v3553_v34  ;;  %v1550_v52 = vmul.f32 %v3413_v45, %v3553_v34  ;;  %v1928_v33 = vsel %vm1224_vm8, 1.0, %v3988_v55  ;;  %v1960_v56 = vsel %vm1389_vm13, 1.0, %v3988_v55  ;;  %v418_v11 = vpop.xlane.xlu0 %417 }
 0x19c   :  { %v995_v9 = vsel %vm994_vm12, %v990_v25, inf  ;;  %v1010_v50 = vsel %vm1009_vm15, %v1005_v10, inf  ;;  %v1020_v49 = vcvt.s32.f32 %v4024_v0  ;;  %v1929_v6 = vsel %vm1225_vm14, 1.0, %v3988_v55  ;;  %v3606_v20 = vpop.eup %2100 }
 0x19d   :  { %996 = vmin.xlane.f32.xlu1 %v995_v9  ;;  %1011 = vmin.xlane.f32.xlu0 %v1010_v50  ;;  %v1160_v24 = vadd.s32 224, %v3012_v30  ;;  %vm1024_vm2 = vcmp.eq.f32.partialorder %v4025_v60, %v3598_v40  ;;  %v1581_v45 = vadd.f32 %v1580_v51, %v1550_v52  ;;  %v1551_v37 = vmul.f32 %v3448_v14, %v3572_v48  ;;  %v4028_v52 = vld [vmem:[#allocation32_spill] sm:$0xff] }
 0x19e   :  { %v1961_v39 = vsel %vm3589_vm1, 1.0, %v3988_v55  ;;  %2102 = vrcp.f32 %v418_v11  ;;  %v1025_v13 = vsel %vm1024_vm2, %v1020_v49, inf  ;;  %vm1325_vm3 = vcmp.gt.f32.partialorder %v3566_v42, %v3034_v46  ;;  %v421_v14 = vpop.xlane.xlu1 %420 }
 0x19f   :  { %vm1359_vm0 = vcmp.le.f32.partialorder %v3566_v42, %v3048_v5  ;;  %v1516_v57 = vadd.f32 %v1515_v12, %v3572_v48  ;;  %v3620_v32 = vmul.f32 %v1960_v56, %v1928_v33  ;;  %v1161_v31 = vadd.s32 232, %v3012_v30  ;;  %v4029_v56 = vld [vmem:[#allocation31_spill] sm:$0xff] }
 0x1a0   :  { %vm1326_vm4 = vcmp.gt.f32.partialorder %v3606_v20, %v3034_v46  ;;  %vm1360_vm5 = vcmp.le.f32.partialorder %v3606_v20, %v3048_v5  ;;  %2104 = vrcp.f32 %v421_v14  ;;  %v1582_v25 = vadd.f32 %v1581_v45, %v1551_v37  ;;  %vm1391_vm6 = vmand %vm1325_vm3, %vm1359_vm0 }
 0x1a1   :  { %1026 = vmin.xlane.f32.xlu1 %v1025_v13  ;;  %4026 = vst [vmem:[#allocation28_spill] sm:$0xff] %v3620_v32  ;;  %v3627_v1 = vmul.f32 %v1961_v39, %v1929_v6  ;;  %vm1226_vm7 = vcmp.lt.s32.totalorder %v1160_v24, %v3025_v22  ;;  %v1517_v10 = vadd.f32 %v1516_v57, %v3620_v32  ;;  %vm1392_vm10 = vmand %vm1326_vm4, %vm1360_vm5  ;;  %v1962_v15 = vsel %vm1391_vm6, 1.0, %v3988_v55  ;;  %v4030_v13 = vld [vmem:[#allocation11_spill] sm:$0xff]  ;;  %v4031_v57 = vld [vmem:[#allocation14_spill] sm:$0xff] }
 0x1a2   :  { %v1552_v51 = vmul.f32 %v3518_v35, %v3620_v32  ;;  %vm1227_vm9 = vcmp.lt.s32.totalorder %v1161_v31, %v3025_v22  ;;  %v1930_v9 = vsel %vm1226_vm7, 1.0, %v3988_v55  ;;  %v1162_v50 = vadd.s32 240, %v3012_v30 }
 0x1a3   :  { %v564_v0 = vcvt.f32.s32 %v4027_v63  ;;  %v1553_v12 = vmul.f32 %v3526_v59, %v3627_v1  ;;  %v579_v33 = vcvt.f32.s32 %v4028_v52  ;;  %v594_v6 = vcvt.f32.s32 %v4029_v56 }
 0x1a4   :  { %v1583_v49 = vadd.f32 %v1582_v25, %v1552_v51  ;;  %v1931_v35 = vsel %vm1227_vm9, 1.0, %v3988_v55  ;;  %v1963_v24 = vsel %vm1392_vm10, 1.0, %v3988_v55  ;;  %v1518_v11 = vadd.f32 %v1517_v10, %v3627_v1 }
 0x1a5   :  { %v3645_v45 = vmul.f32 %v1962_v15, %v1930_v9  ;;  %v1163_v37 = vadd.s32 248, %v3012_v30  ;;  %vm1228_vm11 = vcmp.lt.s32.totalorder %v1162_v50, %v3025_v22  ;;  %v609_v59 = vcvt.f32.s32 %v4030_v13 }
 0x1a6   :  { %v624_v31 = vcvt.f32.s32 %v4031_v57  ;;  %v1584_v14 = vadd.f32 %v1583_v49, %v1553_v12  ;;  %v3651_v25 = vmul.f32 %v1963_v24, %v1931_v35  ;;  %v565_v51 = vshll.u32 %v564_v0, 16  ;;  %v101_v12 = vld [vmem:[%s3877_s2] sm:$0xff] }
 0x1a7   :  { %v580_v63 = vshll.u32 %v579_v33, 16  ;;  %v595_v52 = vshll.u32 %v594_v6, 16  ;;  %v1519_v10 = vadd.f32 %v1518_v11, %v3645_v45  ;;  %v1554_v30 = vmul.f32 %v3566_v42, %v3645_v45  ;;  %v103_v42 = vld [vmem:[%s3877_s2 + $0x10] sm:$0xff]  ;;  %v4032_v24 = vld [vmem:[#allocation12_spill] sm:$0xff] }
 0x1a8   :  { %v1932_v9 = vsel %vm1228_vm11, 1.0, %v3988_v55  ;;  %vm1229_vm8 = vcmp.lt.s32.totalorder %v1163_v37, %v3025_v22  ;;  %v610_v0 = vshll.u32 %v609_v59, 16  ;;  %v625_v49 = vshll.u32 %v624_v31, 16  ;;  %v102_v59 = vld [vmem:[%s3877_s2 + $0x8] sm:$0xff] }
 0x1a9   :  { %v562_v60 = vpop.xlane.xlu0 %561  ;;  %v1585_v6 = vadd.f32 %v1584_v14, %v1554_v30  ;;  %v1555_v35 = vmul.f32 %v3606_v20, %v3651_v25  ;;  %v1933_v31 = vsel %vm1229_vm8, 1.0, %v3988_v55  ;;  %v1520_v14 = vadd.f32 %v1519_v10, %v3651_v25 }
 0x1aa   :  { %v563_v39 = vcvt.f32.s32 %v562_v60  ;;  %v639_v60 = vcvt.f32.s32 %v4032_v24 }
 0x1ab   :  { %v2103_v56 = vpop.eup %2102 }
 0x1ac   :  { %v566_v15 = vadd.s32 %v565_v51, %v563_v39  ;;  %vm1327_vm12 = vcmp.gt.f32.partialorder %v2103_v56, %v3034_v46  ;;  %vm1361_vm13 = vcmp.le.f32.partialorder %v2103_v56, %v3048_v5 }
 0x1ad   :  { %v592_v32 = vpop.xlane.xlu0 %591  ;;  %v577_v33 = vpop.xlane.xlu1 %576  ;;  %vm1393_vm14 = vmand %vm1327_vm12, %vm1361_vm13 }
 0x1ae   :  { %v593_v50 = vcvt.f32.s32 %v592_v32  ;;  %v2105_v32 = vpop.eup %2104  ;;  %v578_v11 = vcvt.f32.s32 %v577_v33  ;;  %v1964_v13 = vsel %vm1393_vm14, 1.0, %v3988_v55  ;;  %vm1032_vm2 = vcmp.eq.s32.totalorder %v566_v15, %v101_v12  ;;  %v105_v15 = vld [vmem:[%s3877_s2 + $0x20] sm:$0xff]  ;;  %v4033_v12 = vld [vmem:[#allocation15_spill] sm:$0xff] }
 0x1af   :  { %v3673_v57 = vmul.f32 %v1964_v13, %v1932_v9  ;;  %vm1328_vm15 = vcmp.gt.f32.partialorder %v2105_v32, %v3034_v46  ;;  %vm1362_vm1 = vcmp.le.f32.partialorder %v2105_v32, %v3048_v5  ;;  %v654_v13 = vcvt.f32.s32 %v4033_v12 }
 0x1b0   :  { %v596_v39 = vadd.s32 %v595_v52, %v593_v50  ;;  %v581_v20 = vadd.s32 %v580_v63, %v578_v11  ;;  %vm1394_vm0 = vmand %vm1328_vm15, %vm1362_vm1  ;;  %v1586_v50 = vadd.f32 %v1585_v6, %v1555_v35  ;;  %v1870_v63 = vsel %vm1032_vm2, 1.0, %v3988_v55 }
 0x1b1   :  { %v607_v51 = vpop.xlane.xlu1 %606  ;;  %v1556_v30 = vmul.f32 %v2103_v56, %v3673_v57  ;;  %v1965_v9 = vsel %vm1394_vm0, 1.0, %v3988_v55  ;;  %v622_v37 = vpop.xlane.xlu0 %621  ;;  %v1521_v5 = vadd.f32 %v1520_v14, %v3673_v57  ;;  %v104_v56 = vld [vmem:[%s3877_s2 + $0x18] sm:$0xff] }
 0x1b2   :  { %vm1034_vm3 = vcmp.eq.s32.totalorder %v596_v39, %v103_v42  ;;  %vm1033_vm4 = vcmp.eq.s32.totalorder %v581_v20, %v102_v59  ;;  %v608_v22 = vcvt.f32.s32 %v607_v51  ;;  %v3684_v46 = vmul.f32 %v1965_v9, %v1933_v31  ;;  %v4034_v9 = vld [vmem:[#allocation13_spill] sm:$0xff] }
 0x1b3   :  { %v1872_v52 = vsel %vm1034_vm3, 1.0, %v3988_v55  ;;  %v1871_v10 = vsel %vm1033_vm4, 1.0, %v3988_v55  ;;  %v623_v33 = vcvt.f32.s32 %v622_v37  ;;  %v1587_v42 = vadd.f32 %v1586_v50, %v1556_v30 }
 0x1b4   :  { %1604 = vperm.xlu1 %1977, %v1872_v52   ;;  %v1972_v6 = vpack.i.bf16 %v1871_v10, %v1870_v63  ;;  %v611_v35 = vadd.s32 %v610_v0, %v608_v22  ;;  %v1557_v24 = vmul.f32 %v2105_v32, %v3684_v46  ;;  %v1522_v11 = vadd.f32 %v1521_v5, %v3684_v46  ;;  %v106_v32 = vld [vmem:[%s3877_s2 + $0x28] sm:$0xff]  ;;  %v4035_v10 = vld [vmem:[#allocation19_spill] sm:$0xff] }
 0x1b5   :  { %v626_v39 = vadd.s32 %v625_v49, %v623_v33  ;;  %v637_v59 = vpop.xlane.xlu1 %636  ;;  %v640_v20 = vshll.u32 %v639_v60, 16  ;;  %v652_v51 = vpop.xlane.xlu0 %651  ;;  %v655_v30 = vshll.u32 %v654_v13, 16  ;;  %v669_v50 = vcvt.f32.s32 %v4034_v9  ;;  %v4037_v13 = vld [vmem:[#allocation17_spill] sm:$0xff] }
 0x1b6   :  { %1973 = vperm.xlu0 %1971, %v1972_v6   ;;  %vm1035_vm5 = vcmp.eq.s32.totalorder %v611_v35, %v104_v56  ;;  %v1588_v31 = vadd.f32 %v1587_v42, %v1557_v24  ;;  %v638_v14 = vcvt.f32.s32 %v637_v59  ;;  %v653_v52 = vcvt.f32.s32 %v652_v51  ;;  %1524 = vst [vmem:[#allocation4] sm:$0xff] %v1522_v11  ;;  %v107_v56 = vld [vmem:[%s3877_s2 + $0x30] sm:$0xff]  ;;  %v4036_v6 = vld [vmem:[#allocation16_spill] sm:$0xff] }
 0x1b7   :  { %v1873_v0 = vsel %vm1035_vm5, 1.0, %v3988_v55  ;;  %vm1036_vm7 = vcmp.eq.s32.totalorder %v626_v39, %v105_v15  ;;  %v714_v33 = vcvt.f32.s32 %v4035_v10  ;;  %v670_v42 = vshll.u32 %v669_v50, 16  ;;  %v109_v10 = vld [vmem:[%s3877_s2 + $0x40] sm:$0xff] }
 0x1b8   :  { %1609 = vperm.xlu1 %1977, %v1873_v0   ;;  %v641_v49 = vadd.s32 %v640_v20, %v638_v14  ;;  %1590 = vst [vmem:[#allocation6] sm:$0xff] %v1588_v31  ;;  %v1874_v60 = vsel %vm1036_vm7, 1.0, %v3988_v55  ;;  %v656_v37 = vadd.s32 %v655_v30, %v653_v52  ;;  %v684_v35 = vcvt.f32.s32 %v4036_v6  ;;  %v108_v14 = vld [vmem:[%s3877_s2 + $0x38] sm:$0xff]  ;;  %v4038_v0 = vld [vmem:[#allocation21_spill] sm:$0xff] }
 0x1b9   :  { %v667_v22 = vpop.xlane.xlu1 %666  ;;  %v682_v63 = vpop.xlane.xlu0 %681  ;;  %v699_v59 = vcvt.f32.s32 %v4037_v13  ;;  %v715_v31 = vshll.u32 %v714_v33, 16  ;;  %v744_v52 = vcvt.f32.s32 %v4038_v0 }
 0x1ba   :  { %v668_v5 = vcvt.f32.s32 %v667_v22  ;;  %vm1037_vm6 = vcmp.eq.s32.totalorder %v641_v49, %v106_v32  ;;  %v683_v15 = vcvt.f32.s32 %v682_v63  ;;  %vm1038_vm9 = vcmp.eq.s32.totalorder %v656_v37, %v107_v56  ;;  %v111_v49 = vld [vmem:[%s3877_s2 + $0x50] sm:$0xff] }
 0x1bb   :  { %v1875_v11 = vsel %vm1037_vm6, 1.0, %v3988_v55  ;;  %v685_v51 = vshll.u32 %v684_v35, 16  ;;  %v1876_v30 = vsel %vm1038_vm9, 1.0, %v3988_v55  ;;  %v4039_v37 = vld [vmem:[#allocation18_spill] sm:$0xff]  ;;  %v745_v33 = vshll.u32 %v744_v52, 16  ;;  %v4042_v52 = vld [vmem:[#allocation23_spill] sm:$0xff] }
 0x1bc   :  { %1614 = vperm.xlu1 %1977, %v1874_v60   ;;  %v671_v39 = vadd.s32 %v670_v42, %v668_v5  ;;  %v700_v60 = vshll.u32 %v699_v59, 16  ;;  %v729_v5 = vcvt.f32.s32 %v4039_v37  ;;  %v4040_v56 = vld [vmem:[#allocation22_spill] sm:$0xff] }
 0x1bd   :  { %v697_v24 = vpop.xlane.xlu1 %696  ;;  %v712_v12 = vpop.xlane.xlu0 %711  ;;  %v686_v9 = vadd.s32 %v685_v51, %v683_v15  ;;  %v774_v42 = vcvt.f32.s32 %v4040_v56  ;;  %v110_v51 = vld [vmem:[%s3877_s2 + $0x48] sm:$0xff] }
 0x1be   :  { %v713_v20 = vcvt.f32.s32 %v712_v12  ;;  %v698_v50 = vcvt.f32.s32 %v697_v24  ;;  %vm1039_vm10 = vcmp.eq.s32.totalorder %v671_v39, %v108_v14  ;;  %v730_v59 = vshll.u32 %v729_v5, 16  ;;  %v4043_v56 = vld [vmem:[#allocation25_spill] sm:$0xff] }
 0x1bf   :  { %v1877_v24 = vsel %vm1039_vm10, 1.0, %v3988_v55  ;;  %vm1040_vm8 = vcmp.eq.s32.totalorder %v686_v9, %v109_v10  ;;  %v775_v0 = vshll.u32 %v774_v42, 16  ;;  %v115_v9 = vld [vmem:[%s3877_s2 + $0x70] sm:$0xff]  ;;  %v789_v42 = vcvt.f32.s32 %v4043_v56 }
 0x1c0   :  { %1619 = vperm.xlu1 %1977, %v1875_v11   ;;  %v716_v32 = vadd.s32 %v715_v31, %v713_v20  ;;  %v113_v11 = vld [vmem:[%s3877_s2 + $0x60] sm:$0xff]  ;;  %v701_v39 = vadd.s32 %v700_v60, %v698_v50  ;;  %v1878_v50 = vsel %vm1040_vm8, 1.0, %v3988_v55 }
 0x1c1   :  { %v727_v22 = vpop.xlane.xlu1 %726  ;;  %v742_v63 = vpop.xlane.xlu0 %741  ;;  %v4041_v31 = vld [vmem:[#allocation20_spill] sm:$0xff] }
 0x1c2   :  { %vm1042_vm11 = vcmp.eq.s32.totalorder %v716_v32, %v111_v49  ;;  %v743_v6 = vcvt.f32.s32 %v742_v63  ;;  %v728_v15 = vcvt.f32.s32 %v727_v22  ;;  %v759_v20 = vcvt.f32.s32 %v4041_v31  ;;  %v114_v31 = vld [vmem:[%s3877_s2 + $0x68] sm:$0xff] }
 0x1c3   :  { %v1880_v35 = vsel %vm1042_vm11, 1.0, %v3988_v55  ;;  %v804_v49 = vcvt.f32.s32 %v4042_v52  ;;  %vm1041_vm13 = vcmp.eq.s32.totalorder %v701_v39, %v110_v51 }
 0x1c4   :  { %1624 = vperm.xlu1 %1977, %v1876_v30   ;;  %1644 = vperm.xlu0 %1971, %v1880_v35   ;;  %v746_v12 = vadd.s32 %v745_v33, %v743_v6  ;;  %v731_v22 = vadd.s32 %v730_v59, %v728_v15  ;;  %v760_v63 = vshll.u32 %v759_v20, 16  ;;  %v112_v33 = vld [vmem:[%s3877_s2 + $0x58] sm:$0xff]  ;;  %v117_v15 = vld [vmem:[%s3877_s2 + $0x80] sm:$0xff]  ;;  %v790_v20 = vshll.u32 %v789_v42, 16 }
 0x1c5   :  { %v757_v13 = vpop.xlane.xlu1 %756  ;;  %v772_v14 = vpop.xlane.xlu0 %771  ;;  %v805_v6 = vshll.u32 %v804_v49, 16  ;;  %v864_v42 = vcvt.f32.s32 %v3385_v41  ;;  %v120_v41 = vld [vmem:[%s3877_s2 + $0x98] sm:$0xff] }
 0x1c6   :  { %v773_v32 = vcvt.f32.s32 %v772_v14  ;;  %vm1044_vm12 = vcmp.eq.s32.totalorder %v746_v12, %v113_v11  ;;  %v758_v60 = vcvt.f32.s32 %v757_v13  ;;  %v1879_v11 = vsel %vm1041_vm13, 1.0, %v3988_v55  ;;  %v4044_v14 = vld [vmem:[#allocation24_spill] sm:$0xff] }
 0x1c7   :  { %v1882_v30 = vsel %vm1044_vm12, 1.0, %v3988_v55  ;;  %vm1043_vm15 = vcmp.eq.s32.totalorder %v731_v22, %v112_v33  ;;  %v819_v51 = vcvt.f32.s32 %v4044_v14  ;;  %v121_v14 = vld [vmem:[%s3877_s2 + $0xa0] sm:$0xff] }
 0x1c8   :  { %1629 = vperm.xlu1 %1977, %v1877_v24   ;;  %v776_v37 = vadd.s32 %v775_v0, %v773_v32  ;;  %1654 = vperm.xlu0 %1971, %v1882_v30   ;;  %v761_v39 = vadd.s32 %v760_v63, %v758_v60  ;;  %v1881_v52 = vsel %vm1043_vm15, 1.0, %v3988_v55  ;;  %v116_v30 = vld [vmem:[%s3877_s2 + $0x78] sm:$0xff]  ;;  %v118_v60 = vld [vmem:[%s3877_s2 + $0x88] sm:$0xff]  ;;  %v834_v63 = vcvt.f32.s32 %v3352_v61 }
 0x1c9   :  { %v787_v5 = vpop.xlane.xlu1 %786  ;;  %v802_v10 = vpop.xlane.xlu0 %801  ;;  %v894_v61 = vcvt.f32.s32 %v3417_v62  ;;  %v924_v62 = vcvt.f32.s32 %v3458_v44  ;;  %v123_v44 = vld [vmem:[%s3877_s2 + $0xb0] sm:$0xff] }
 0x1ca   :  { %v803_v35 = vcvt.f32.s32 %v802_v10  ;;  %vm1046_vm14 = vcmp.eq.s32.totalorder %v776_v37, %v115_v9  ;;  %v788_v12 = vcvt.f32.s32 %v787_v5  ;;  %vm1045_vm2 = vcmp.eq.s32.totalorder %v761_v39, %v114_v31 }
 0x1cb   :  { %v1884_v24 = vsel %vm1046_vm14, 1.0, %v3988_v55  ;;  %v1883_v9 = vsel %vm1045_vm2, 1.0, %v3988_v55  ;;  %v849_v10 = vcvt.f32.s32 %v3376_v26  ;;  %v835_v56 = vshll.u32 %v834_v63, 16 }
 0x1cc   :  { %1634 = vperm.xlu1 %1977, %v1878_v50   ;;  %v806_v13 = vadd.s32 %v805_v6, %v803_v35  ;;  %1664 = vperm.xlu0 %1971, %v1884_v24   ;;  %v791_v49 = vadd.s32 %v790_v20, %v788_v12  ;;  %v820_v50 = vshll.u32 %v819_v51, 16  ;;  %v119_v35 = vld [vmem:[%s3877_s2 + $0x90] sm:$0xff]  ;;  %v879_v39 = vcvt.f32.s32 %v3405_v3 }
 0x1cd   :  { %v817_v59 = vpop.xlane.xlu1 %816  ;;  %v909_v3 = vcvt.f32.s32 %v3451_v17 }
 0x1ce   :  { %vm1048_vm1 = vcmp.eq.s32.totalorder %v806_v13, %v117_v15  ;;  %v818_v32 = vcvt.f32.s32 %v817_v59  ;;  %vm1047_vm3 = vcmp.eq.s32.totalorder %v791_v49, %v116_v30  ;;  %v850_v15 = vshll.u32 %v849_v10, 16 }
 0x1cf   :  { %v1886_v0 = vsel %vm1048_vm1, 1.0, %v3988_v55  ;;  %v1885_v37 = vsel %vm1047_vm3, 1.0, %v3988_v55  ;;  %v865_v59 = vshll.u32 %v864_v42, 16  ;;  %v895_v30 = vshll.u32 %v894_v61, 16 }
 0x1d0   :  { %1639 = vperm.xlu1 %1977, %v1879_v11   ;;  %1674 = vperm.xlu0 %1971, %v1886_v0   ;;  %v821_v22 = vadd.s32 %v820_v50, %v818_v32  ;;  %v925_v10 = vshll.u32 %v924_v62, 16  ;;  %v984_v61 = vcvt.f32.s32 %v3539_v8  ;;  %v127_v8 = vld [vmem:[%s3877_s2 + $0xd0] sm:$0xff] }
 0x1d2   :  { %vm1049_vm0 = vcmp.eq.s32.totalorder %v821_v22, %v118_v60  ;;  %v122_v22 = vld [vmem:[%s3877_s2 + $0xa8] sm:$0xff] }
 0x1d3   :  { %v1887_v5 = vsel %vm1049_vm0, 1.0, %v3988_v55 }
 0x1d4   :  { %1649 = vperm.xlu1 %1977, %v1881_v52   ;;  %v880_v52 = vshll.u32 %v879_v39, 16 }
 0x1d8   :  { %1659 = vperm.xlu1 %1977, %v1883_v9  }
 0x1dc   :  { %1669 = vperm.xlu1 %1977, %v1885_v37   ;;  %v910_v37 = vshll.u32 %v909_v3, 16  ;;  %v126_v3 = vld [vmem:[%s3877_s2 + $0xc8] sm:$0xff] }
 0x1e0   :  { %1679 = vperm.xlu1 %1977, %v1887_v5  }
 0x20b   :  { %v832_v33 = vpop.xlane.xlu0 %831 }
 0x20c   :  { %v833_v6 = vcvt.f32.s32 %v832_v33  ;;  %v939_v33 = vcvt.f32.s32 %v3479_v7  ;;  %v125_v7 = vld [vmem:[%s3877_s2 + $0xc0] sm:$0xff] }
 0x20e   :  { %v836_v24 = vadd.s32 %v835_v56, %v833_v6  ;;  %v954_v6 = vcvt.f32.s32 %v3486_v53 }
 0x20f   :  { %v847_v11 = vpop.xlane.xlu1 %846  ;;  %v862_v13 = vpop.xlane.xlu0 %861 }
 0x210   :  { %v848_v12 = vcvt.f32.s32 %v847_v11  ;;  %v863_v26 = vcvt.f32.s32 %v862_v13  ;;  %vm1050_vm4 = vcmp.eq.s32.totalorder %v836_v24, %v119_v35  ;;  %v124_v11 = vld [vmem:[%s3877_s2 + $0xb8] sm:$0xff] }
 0x211   :  { %v1888_v20 = vsel %vm1050_vm4, 1.0, %v3988_v55 }
 0x212   :  { %v851_v31 = vadd.s32 %v850_v15, %v848_v12  ;;  %v866_v51 = vadd.s32 %v865_v59, %v863_v26  ;;  %1684 = vperm.xlu0 %1971, %v1888_v20   ;;  %v969_v12 = vcvt.f32.s32 %v3528_v29  ;;  %v940_v59 = vshll.u32 %v939_v33, 16 }
 0x213   :  { %v877_v0 = vpop.xlane.xlu1 %876 }
 0x214   :  { %v878_v49 = vcvt.f32.s32 %v877_v0  ;;  %v892_v32 = vpop.xlane.xlu0 %891  ;;  %vm1051_vm5 = vcmp.eq.s32.totalorder %v851_v31, %v120_v41  ;;  %vm1052_vm7 = vcmp.eq.s32.totalorder %v866_v51, %v121_v14  ;;  %v955_v31 = vshll.u32 %v954_v6, 16 }
 0x215   :  { %v893_v50 = vcvt.f32.s32 %v892_v32  ;;  %v1889_v9 = vsel %vm1051_vm5, 1.0, %v3988_v55  ;;  %v1890_v17 = vsel %vm1052_vm7, 1.0, %v3988_v55  ;;  %v970_v0 = vshll.u32 %v969_v12, 16 }
 0x216   :  { %v881_v60 = vadd.s32 %v880_v52, %v878_v49  ;;  %1689 = vperm.xlu1 %1977, %v1889_v9   ;;  %1694 = vperm.xlu0 %1971, %v1890_v17   ;;  %v985_v49 = vshll.u32 %v984_v61, 16  ;;  %v999_v32 = vcvt.f32.s32 %v3559_v28  ;;  %v1014_v9 = vcvt.f32.s32 %v3570_v21  ;;  %v128_v17 = vld [vmem:[%s3877_s2 + $0xd8] sm:$0xff]  ;;  %v129_v28 = vld [vmem:[%s3877_s2 + $0xe0] sm:$0xff] }
 0x217   :  { %v896_v5 = vadd.s32 %v895_v30, %v893_v50  ;;  %v907_v63 = vpop.xlane.xlu1 %906 }
 0x218   :  { %v908_v56 = vcvt.f32.s32 %v907_v63  ;;  %v922_v42 = vpop.xlane.xlu0 %921  ;;  %vm1053_vm6 = vcmp.eq.s32.totalorder %v881_v60, %v122_v22  ;;  %v1000_v21 = vshll.u32 %v999_v32, 16 }
 0x219   :  { %v923_v35 = vcvt.f32.s32 %v922_v42  ;;  %v1891_v24 = vsel %vm1053_vm6, 1.0, %v3988_v55  ;;  %vm1054_vm9 = vcmp.eq.s32.totalorder %v896_v5, %v123_v44  ;;  %v1015_v42 = vshll.u32 %v1014_v9, 16 }
 0x21a   :  { %v911_v15 = vadd.s32 %v910_v37, %v908_v56  ;;  %1699 = vperm.xlu1 %1977, %v1891_v24   ;;  %v1892_v39 = vsel %vm1054_vm9, 1.0, %v3988_v55  ;;  %v130_v24 = vld [vmem:[%s3877_s2 + $0xe8] sm:$0xff] }
 0x21b   :  { %v926_v13 = vadd.s32 %v925_v10, %v923_v35  ;;  %1704 = vperm.xlu0 %1971, %v1892_v39   ;;  %v1029_v10 = vcvt.f32.s32 %v3598_v40  ;;  %v131_v40 = vld [vmem:[%s3877_s2 + $0xf0] sm:$0xff] }
 0x21c   :  { %v937_v53 = vpop.xlane.xlu1 %936  ;;  %vm1055_vm10 = vcmp.eq.s32.totalorder %v911_v15, %v124_v11 }
 0x21d   :  { %v938_v26 = vcvt.f32.s32 %v937_v53  ;;  %v952_v41 = vpop.xlane.xlu0 %951  ;;  %v1893_v14 = vsel %vm1055_vm10, 1.0, %v3988_v55  ;;  %vm1056_vm11 = vcmp.eq.s32.totalorder %v926_v13, %v125_v7  ;;  %v1030_v12 = vshll.u32 %v1029_v10, 16 }
 0x21e   :  { %v953_v20 = vcvt.f32.s32 %v952_v41  ;;  %1709 = vperm.xlu1 %1977, %v1893_v14   ;;  %v1894_v29 = vsel %vm1056_vm11, 1.0, %v3988_v55 }
 0x21f   :  { %v941_v51 = vadd.s32 %v940_v59, %v938_v26  ;;  %1714 = vperm.xlu0 %1971, %v1894_v29   ;;  %v132_v59 = vld [vmem:[%s3877_s2 + $0xf8] sm:$0xff] }
 0x220   :  { %v956_v52 = vadd.s32 %v955_v31, %v953_v20  ;;  %v967_v62 = vpop.xlane.xlu1 %966 }
 0x221   :  { %v968_v30 = vcvt.f32.s32 %v967_v62  ;;  %v982_v50 = vpop.xlane.xlu0 %981  ;;  %vm1057_vm8 = vcmp.eq.s32.totalorder %v941_v51, %v126_v3 }
 0x222   :  { %v983_v22 = vcvt.f32.s32 %v982_v50  ;;  %v1895_v60 = vsel %vm1057_vm8, 1.0, %v3988_v55  ;;  %vm1058_vm12 = vcmp.eq.s32.totalorder %v956_v52, %v127_v8 }
 0x223   :  { %v971_v44 = vadd.s32 %v970_v0, %v968_v30  ;;  %1719 = vperm.xlu1 %1977, %v1895_v60   ;;  %v1896_v37 = vsel %vm1058_vm12, 1.0, %v3988_v55 }
 0x224   :  { %v986_v5 = vadd.s32 %v985_v49, %v983_v22  ;;  %1724 = vperm.xlu0 %1971, %v1896_v37  }
 0x225   :  { %vm1059_vm13 = vcmp.eq.s32.totalorder %v971_v44, %v128_v17 }
 0x226   :  { %v997_v63 = vpop.xlane.xlu1 %996  ;;  %v1012_v56 = vpop.xlane.xlu0 %1011  ;;  %v1897_v35 = vsel %vm1059_vm13, 1.0, %v3988_v55  ;;  %vm1060_vm14 = vcmp.eq.s32.totalorder %v986_v5, %v129_v28 }
 0x227   :  { %v998_v33 = vcvt.f32.s32 %v997_v63  ;;  %v1013_v6 = vcvt.f32.s32 %v1012_v56  ;;  %1729 = vperm.xlu1 %1977, %v1897_v35   ;;  %v1898_v15 = vsel %vm1060_vm14, 1.0, %v3988_v55 }
 0x228   :  { %1734 = vperm.xlu0 %1971, %v1898_v15  }
 0x229   :  { %v1001_v11 = vadd.s32 %v1000_v21, %v998_v33  ;;  %v1016_v39 = vadd.s32 %v1015_v42, %v1013_v6 }
 0x22a   :  { %v1027_v7 = vpop.xlane.xlu1 %1026 }
 0x22b   :  { %v1028_v13 = vcvt.f32.s32 %v1027_v7  ;;  %vm1061_vm15 = vcmp.eq.s32.totalorder %v1001_v11, %v130_v24  ;;  %vm1062_vm1 = vcmp.eq.s32.totalorder %v1016_v39, %v131_v40 }
 0x22c   :  { %v1899_v53 = vsel %vm1061_vm15, 1.0, %v3988_v55  ;;  %v1900_v26 = vsel %vm1062_vm1, 1.0, %v3988_v55 }
 0x22d   :  { %v1031_v61 = vadd.s32 %v1030_v12, %v1028_v13  ;;  %1739 = vperm.xlu1 %1977, %v1899_v53   ;;  %1744 = vperm.xlu0 %1971, %v1900_v26  }
 0x22f   :  { %vm1063_vm2 = vcmp.eq.s32.totalorder %v1031_v61, %v132_v59 }
 0x230   :  { %v1901_v41 = vsel %vm1063_vm2, 1.0, %v3988_v55 }
 0x231   :  { %1749 = vperm.xlu1 %1977, %v1901_v41  }
 0x232   :  { %2117 = shalt.err (!%p2114_p4)
}
 0x233   :  { %1836 = dma.vmem_to_hbm [thread:$0]  %s1834_s18, 128, %s3879_s4, [#allocation7]  }
 0x234   :  { %s2126_s23 = scalar_lea.vmem %s1824_s20, 128  ;;  %p2131_p6 = scmp.lt.s32.totalorder %s1824_s20, %s1824_s20 }
 0x235   :  { %p2127_p5 = scmp.ne.s32.totalorder %s1824_s20, %s2126_s23  ;;  %p2132_p7 = scmp.lt.s32.totalorder %s2126_s23, %s2126_s23 }
 0x237   :  { %p2133_p8 = por %p2132_p7, %p2131_p6 }
 0x239   :  { %p2134_p9 = pnand %p2133_p8, %p2127_p5 }
 0x23b   :  { %2137 = shalt.err (!%p2134_p9)
}
 0x23c   :  { %1826 = dma.vmem_to_hbm [thread:$0]  %s1824_s20, 128, %s3878_s3, [#allocation5]   ;;  %v1605_v55 = vpop.permute.xlu1 %1604  ;;  %v1974_v14 = vpop.permute.xlu0 %1973  ;;  %v4045_v8 = vld [vmem:[#allocation27_spill] sm:$0xff]  ;;  %v4046_v52 = vld [vmem:[#allocation26_spill] sm:$0xff]  ;;  %v4047_v30 = vld [vmem:[#allocation33_spill] sm:$0xff] }
 0x23d   :  { %v1976_v3 = vunpack.i.h.bf16 %v1974_v14  ;;  %v1975_v51 = vunpack.i.l.bf16 %v1974_v14  ;;  %v1754_v50 = vmul.f32 %v1605_v55, %v4047_v30  ;;  %v4048_v10 = vld [vmem:[#allocation34_spill] sm:$0xff]  ;;  %v4049_v6 = vld [vmem:[#allocation35_spill] sm:$0xff]  ;;  %v4050_v11 = vld [vmem:[#allocation36_spill] sm:$0xff]  ;;  %s2174_s3 = smov [#allocation8]  }
 0x23e   :  { %v4051_v59 = vld [vmem:[#allocation37_spill] sm:$0xff]  ;;  %v4052_v26 = vld [vmem:[#allocation39_spill] sm:$0xff]  ;;  %s1843_s4 = sshll.u32 %s2174_s3, 4  ;;  %s1844_s4 = int_to_ptr.vmem [resolvable:$true] %s1843_s4 }
 0x23f   :  { %v1753_v0 = vmul.f32 %v1976_v3, %v4045_v8  ;;  %v1752_v62 = vmul.f32 %v1975_v51, %v4046_v52  ;;  %v4053_v3 = vld [vmem:[#allocation38_spill] sm:$0xff]  ;;  %s2146_s26 = scalar_lea.vmem %s1844_s4, 128  ;;  %p2151_p11 = scmp.lt.s32.totalorder %s1844_s4, %s1844_s4 }
 0x240   :  { %v1610_v31 = vpop.permute.xlu1 %1609  ;;  %v1645_v40 = vpop.permute.xlu0 %1644  ;;  %p2147_p10 = scmp.ne.s32.totalorder %s1844_s4, %s2146_s26  ;;  %p2152_p12 = scmp.lt.s32.totalorder %s2146_s26, %s2146_s26 }
 0x241   :  { %v1784_v32 = vadd.f32 %v1753_v0, %v1752_v62  ;;  %v1755_v60 = vmul.f32 %v1610_v31, %v3172_v16  ;;  %v1762_v7 = vmul.f32 %v1645_v40, %v3234_v18  ;;  %v4055_v62 = vld [vmem:[#allocation40_spill] sm:$0xff] }
 0x242   :  { %p2153_p13 = por %p2152_p12, %p2151_p11 }
 0x243   :  { %v1785_v9 = vadd.f32 %v1784_v32, %v1754_v50 }
 0x244   :  { %v1615_v20 = vpop.permute.xlu1 %1614  ;;  %p2154_p0 = pnand %p2153_p13, %p2147_p10 }
 0x245   :  { %v1786_v17 = vadd.f32 %v1785_v9, %v1755_v60  ;;  %v1756_v44 = vmul.f32 %v1615_v20, %v3182_v4 }
 0x247   :  { %v1787_v28 = vadd.f32 %v1786_v17, %v1756_v44 }
 0x248   :  { %v1620_v29 = vpop.permute.xlu1 %1619 }
 0x249   :  { %v1757_v5 = vmul.f32 %v1620_v29, %v3190_v47  ;;  %v4054_v29 = vld [vmem:[#allocation41_spill] sm:$0xff] }
 0x24b   :  { %v1788_v21 = vadd.f32 %v1787_v28, %v1757_v5 }
 0x24c   :  { %v1625_v49 = vpop.permute.xlu1 %1624 }
 0x24d   :  { %v1758_v63 = vmul.f32 %v1625_v49, %v3196_v58  ;;  %v1655_v58 = vpop.permute.xlu0 %1654 }
 0x24e   :  { %v1764_v61 = vmul.f32 %v1655_v58, %v4051_v59 }
 0x24f   :  { %v1789_v42 = vadd.f32 %v1788_v21, %v1758_v63 }
 0x250   :  { %v1630_v22 = vpop.permute.xlu1 %1629 }
 0x251   :  { %v1759_v33 = vmul.f32 %v1630_v22, %v4048_v10  ;;  %v1665_v31 = vpop.permute.xlu0 %1664 }
 0x252   :  { %v1766_v51 = vmul.f32 %v1665_v31, %v4053_v3 }
 0x253   :  { %v1790_v24 = vadd.f32 %v1789_v42, %v1759_v33 }
 0x254   :  { %v1635_v37 = vpop.permute.xlu1 %1634 }
 0x255   :  { %v1760_v35 = vmul.f32 %v1635_v37, %v4049_v6  ;;  %v1675_v18 = vpop.permute.xlu0 %1674 }
 0x256   :  { %v1768_v49 = vmul.f32 %v1675_v18, %v4055_v62 }
 0x257   :  { %v1791_v16 = vadd.f32 %v1790_v24, %v1760_v35 }
 0x258   :  { %v1640_v56 = vpop.permute.xlu1 %1639 }
 0x259   :  { %v1761_v15 = vmul.f32 %v1640_v56, %v4050_v11 }
 0x25b   :  { %v1792_v39 = vadd.f32 %v1791_v16, %v1761_v15 }
 0x25c   :  { %v1650_v4 = vpop.permute.xlu1 %1649 }
 0x25d   :  { %v1763_v47 = vmul.f32 %v1650_v4, %v3258_v23  ;;  %v1793_v12 = vadd.f32 %v1792_v39, %v1762_v7  ;;  %v4056_v39 = vld [vmem:[#allocation28_spill] sm:$0xff] }
 0x25f   :  { %v1794_v13 = vadd.f32 %v1793_v12, %v1763_v47 }
 0x260   :  { %v1660_v53 = vpop.permute.xlu1 %1659 }
 0x261   :  { %v1765_v41 = vmul.f32 %v1660_v53, %v4052_v26  ;;  %v1795_v55 = vadd.f32 %v1794_v13, %v1764_v61 }
 0x263   :  { %v1796_v20 = vadd.f32 %v1795_v55, %v1765_v41 }
 0x264   :  { %v1670_v14 = vpop.permute.xlu1 %1669 }
 0x265   :  { %v1767_v8 = vmul.f32 %v1670_v14, %v4054_v29  ;;  %v1797_v0 = vadd.f32 %v1796_v20, %v1766_v51 }
 0x267   :  { %v1798_v52 = vadd.f32 %v1797_v0, %v1767_v8 }
 0x268   :  { %v1680_v23 = vpop.permute.xlu1 %1679 }
 0x269   :  { %v1769_v32 = vmul.f32 %v1680_v23, %v3315_v54  ;;  %v1799_v30 = vadd.f32 %v1798_v52, %v1768_v49 }
 0x26b   :  { %v1800_v22 = vadd.f32 %v1799_v30, %v1769_v32 }
 0x28d   :  { %v1685_v50 = vpop.permute.xlu0 %1684 }
 0x28e   :  { %v1770_v9 = vmul.f32 %v1685_v50, %v3333_v38 }
 0x290   :  { %v1801_v17 = vadd.f32 %v1800_v22, %v1770_v9 }
 0x291   :  { %v1690_v60 = vpop.permute.xlu1 %1689  ;;  %v1695_v37 = vpop.permute.xlu0 %1694 }
 0x292   :  { %v1771_v44 = vmul.f32 %v1690_v60, %v3344_v36  ;;  %v1772_v5 = vmul.f32 %v1695_v37, %v3393_v19 }
 0x294   :  { %v1802_v28 = vadd.f32 %v1801_v17, %v1771_v44 }
 0x295   :  { %v1700_v63 = vpop.permute.xlu1 %1699 }
 0x296   :  { %v1803_v21 = vadd.f32 %v1802_v28, %v1772_v5  ;;  %v1773_v10 = vmul.f32 %v1700_v63, %v3407_v43  ;;  %v1705_v33 = vpop.permute.xlu0 %1704 }
 0x297   :  { %v1774_v54 = vmul.f32 %v1705_v33, %v3461_v27 }
 0x298   :  { %v1804_v56 = vadd.f32 %v1803_v21, %v1773_v10 }
 0x299   :  { %v1710_v42 = vpop.permute.xlu1 %1709 }
 0x29a   :  { %v1805_v6 = vadd.f32 %v1804_v56, %v1774_v54  ;;  %v1775_v38 = vmul.f32 %v1710_v42, %v3489_v2  ;;  %v1715_v35 = vpop.permute.xlu0 %1714 }
 0x29b   :  { %v1776_v36 = vmul.f32 %v1715_v35, %v3553_v34 }
 0x29c   :  { %v1806_v24 = vadd.f32 %v1805_v6, %v1775_v38 }
 0x29e   :  { %v1720_v11 = vpop.permute.xlu1 %1719  ;;  %v1807_v15 = vadd.f32 %v1806_v24, %v1776_v36 }
 0x29f   :  { %v1777_v19 = vmul.f32 %v1720_v11, %v3572_v48  ;;  %v1725_v16 = vpop.permute.xlu0 %1724 }
 0x2a0   :  { %v1778_v43 = vmul.f32 %v1725_v16, %v4056_v39 }
 0x2a1   :  { %v1808_v40 = vadd.f32 %v1807_v15, %v1777_v19 }
 0x2a2   :  { %v1730_v4 = vpop.permute.xlu1 %1729 }
 0x2a3   :  { %v1809_v7 = vadd.f32 %v1808_v40, %v1778_v43  ;;  %v1779_v27 = vmul.f32 %v1730_v4, %v3627_v1  ;;  %v1735_v47 = vpop.permute.xlu0 %1734 }
 0x2a4   :  { %v1780_v2 = vmul.f32 %v1735_v47, %v3645_v45 }
 0x2a5   :  { %v1810_v12 = vadd.f32 %v1809_v7, %v1779_v27 }
 0x2a7   :  { %v1811_v13 = vadd.f32 %v1810_v12, %v1780_v2 }
 0x2a8   :  { %v1740_v58 = vpop.permute.xlu1 %1739  ;;  %v1745_v53 = vpop.permute.xlu0 %1744 }
 0x2a9   :  { %v1781_v34 = vmul.f32 %v1740_v58, %v3651_v25  ;;  %v1782_v48 = vmul.f32 %v1745_v53, %v3673_v57 }
 0x2ab   :  { %v1812_v59 = vadd.f32 %v1811_v13, %v1781_v34 }
 0x2ac   :  { %v1750_v61 = vpop.permute.xlu1 %1749 }
 0x2ad   :  { %v1813_v26 = vadd.f32 %v1812_v59, %v1782_v48  ;;  %v1783_v41 = vmul.f32 %v1750_v61, %v3684_v46 }
 0x2af   :  { %v1814_v55 = vadd.f32 %v1813_v26, %v1783_v41 }
 0x2b1   :  { %1816 = vst [vmem:[#allocation8] sm:$0xff] %v1814_v55 }
 0x2b2   :  { %2157 = shalt.err (!%p2154_p0)
}
 0x2b3   :  { %1846 = dma.vmem_to_hbm [thread:$0]  %s1844_s4, 128, %s3880_s5, [#allocation7]  }
 0x2b4   :  { %2166 = dma.done.wait [#allocation5], 128  }
 0x2b5   :  { %2167 = vsyncadd [#allocation5], 4294967168 }
 0x2b6   :  { %2168 = dma.done.wait [#allocation7], 256  }
 0x2b7   :  { %2169 = vsyncadd [#allocation7], 4294967040 }
 0x2b8   :  { %1856 = vsyncpa [#allocation5], 1 }
 0x2b9   :  { %1857 = vsyncpa [#allocation7], 1 }

</bundles_post_ra>
